<compile_context>
chip_gen: v7x
topology: tpu7x:2x2x1
jax: 0.10.0
libtpu: 0.0.40
codegen_flags: <defaults>
</compile_context>

<pallas_src>
import functools

import jax
import jax.numpy as jnp
from jax.experimental import pallas as pl
from jax.experimental.pallas import tpu as pltpu

# ----------------------------- model config ---------------------------------
HIDDEN = 32          # classifier_hidden_size / encoder hidden size
NUM_HEADS = 2
HEAD_DIM = HIDDEN // NUM_HEADS
FFN = 64             # intermediate size
NUM_LAYERS = 2
VOCAB = 100          # len_tokenizer (after resize_token_embeddings)
MAX_POS = 16
NUM_LABEL = 3
QKV_PAD = 128        # fused QKV lane-padded width (3*HIDDEN = 96 -> 128)
LOGIT_PAD = 128      # lane-dense padded logits width (sliced to NUM_LABEL outside)
LN_EPS = 1e-5


# ----------------------------- in-kernel helpers ----------------------------
def _ln(x, g, b):
    # Independent reductions: var = E[x^2] - mu^2 (shorter XLU critical path
    # than mean -> centered second moment).
    mu = jnp.mean(x, axis=-1, keepdims=True)
    ms = jnp.mean(x * x, axis=-1, keepdims=True)
    var = ms - mu * mu
    return (x - mu) * jax.lax.rsqrt(var + LN_EPS) * g + b


def _gelu(x):
    # TODO(synk): HF RoBERTa uses exact erf-GELU; tanh approximation kept for
    # guaranteed Mosaic lowering (EUP tanh), tiny numerical deviation.
    c = 0.7978845608028654  # sqrt(2/pi)
    return 0.5 * x * (1.0 + jnp.tanh(c * (x + 0.044715 * x * x * x)))


# ----------------------------- fused kernel ----------------------------------
def fused_forward_kernel(emb_ref, mask_ref, emb_ln_ref,
                         wqkv_ref, bqkv_ref, wo_ref, bo_ref, ln1_ref,
                         w1_ref, b1_ref, w2_ref, b2_ref, ln2_ref,
                         cls_dw_ref, cls_db_ref, cls_ow_ref, cls_ob_ref,
                         out_ref, *, num_heads, num_layers):
    # One grid step == one batch row; activations (S, H) stay resident in VMEM.
    _, S, H = emb_ref.shape
    hd = H // num_heads
    scale = 1.0 / (hd ** 0.5)

    # Additive key-mask bias for this batch row: (1, S), broadcast over (S, S).
    mask_row = mask_ref[0]                                    # (1, S) f32
    bias = jnp.where(mask_row > 0.5, 0.0, -1e9)

    # embedding LayerNorm (dropout = identity, eval mode); math in f32
    emb_ln = emb_ln_ref[...]                                  # (2, H) = [gamma; beta]
    x = _ln(emb_ref[0].astype(jnp.float32), emb_ln[0:1, :], emb_ln[1:2, :])

    for l in range(num_layers):                               # static unrolled layers
        # ---- self attention: single fused, 128-lane-padded QKV matmul ----
        qkv = (jnp.dot(x.astype(jnp.bfloat16), wqkv_ref[l],
                       preferred_element_type=jnp.float32)
               + bqkv_ref[l])                                 # (S, 128)

        ctx_heads = []
        for h in range(num_heads):                            # static 2-iter loop
            qh = qkv[:, h * hd:(h + 1) * hd]
            kh = qkv[:, H + h * hd: H + (h + 1) * hd]
            vh = qkv[:, 2 * H + h * hd: 2 * H + (h + 1) * hd]
            s = jax.lax.dot_general(
                qh.astype(jnp.bfloat16), kh.astype(jnp.bfloat16),
                (((1,), (1,)), ((), ())),
                preferred_element_type=jnp.float32) * scale + bias   # (S, S)
            m = jnp.max(s, axis=-1, keepdims=True)
            e = jnp.exp(s - m)
            p = e * pl.reciprocal(jnp.sum(e, axis=-1, keepdims=True), approx=True)
            ctx_heads.append(jnp.dot(p.astype(jnp.bfloat16),
                                     vh.astype(jnp.bfloat16),
                                     preferred_element_type=jnp.float32))  # (S, hd)
        # lane-contiguous "concat" of head contexts (free), one K=H Wo matmul
        ctx = jnp.concatenate(ctx_heads, axis=-1)             # (S, H)
        attn_out = (jnp.dot(ctx.astype(jnp.bfloat16), wo_ref[l],
                            preferred_element_type=jnp.float32)
                    + bo_ref[l])

        ln1 = ln1_ref[l]
        h1 = _ln(x + attn_out, ln1[0:1, :], ln1[1:2, :])

        # ---- feed-forward ----
        ff = _gelu(jnp.dot(h1.astype(jnp.bfloat16), w1_ref[l],
                           preferred_element_type=jnp.float32) + b1_ref[l])
        ff = jnp.dot(ff.astype(jnp.bfloat16), w2_ref[l],
                     preferred_element_type=jnp.float32) + b2_ref[l]
        ln2 = ln2_ref[l]
        x = _ln(h1 + ff, ln2[0:1, :], ln2[1:2, :])

    # ---- SimpleClassifier head on the CLS row only (dropout = identity) ----
    cls = x[0:1, :]                                           # (1, H)
    hcls = jnp.tanh(jnp.dot(cls.astype(jnp.bfloat16), cls_dw_ref[...],
                            preferred_element_type=jnp.float32) + cls_db_ref[...])
    logits = (jnp.dot(hcls.astype(jnp.bfloat16), cls_ow_ref[...],
                      preferred_element_type=jnp.float32)
              + cls_ob_ref[...])                              # (1, 128) lane-dense
    out_ref[0] = logits


# ----------------------------- pallas wrapper ---------------------------------
def fused_forward_pallas(emb, mask, params):
    B, S, H = emb.shape
    kernel = functools.partial(fused_forward_kernel, num_heads=NUM_HEADS,
                               num_layers=NUM_LAYERS)

    def full(a):
        # whole array resident every grid step (weights shared across batches)
        n = a.ndim
        return pl.BlockSpec(a.shape, lambda b, _n=n: (0,) * _n)

    in_specs = [
        pl.BlockSpec((1, S, H), lambda b: (b, 0, 0)),          # emb, per-batch
        pl.BlockSpec((1, 1, S), lambda b: (b, 0, 0)),          # mask, per-batch
        full(params['emb_ln']),
        full(params['wqkv']), full(params['bqkv']),
        full(params['wo']), full(params['bo']), full(params['ln1']),
        full(params['w1']), full(params['b1']),
        full(params['w2']), full(params['b2']), full(params['ln2']),
        full(params['cls_dense_w']), full(params['cls_dense_b']),
        full(params['cls_out_w']), full(params['cls_out_b']),
    ]
    return pl.pallas_call(
        kernel,
        grid=(B,),
        in_specs=in_specs,
        out_specs=pl.BlockSpec((1, 1, LOGIT_PAD), lambda b: (b, 0, 0)),
        out_shape=jax.ShapeDtypeStruct((B, 1, LOGIT_PAD), jnp.float32),
        compiler_params=pltpu.CompilerParams(
            dimension_semantics=("parallel",)),                # v7x: 2 TCs share batches
    )(emb, mask,
      params['emb_ln'],
      params['wqkv'], params['bqkv'], params['wo'], params['bo'], params['ln1'],
      params['w1'], params['b1'], params['w2'], params['b2'], params['ln2'],
      params['cls_dense_w'], params['cls_dense_b'],
      params['cls_out_w'], params['cls_out_b'])


# ----------------------------- parameter init --------------------------------
def init_params(key):
    def nrm(k, shape):
        return jax.random.normal(k, shape, dtype=jnp.float32) * 0.02

    def ln_pair():
        return jnp.stack([jnp.ones((HIDDEN,), jnp.float32),
                          jnp.zeros((HIDDEN,), jnp.float32)])       # (2, H)

    keys = jax.random.split(key, 5 + NUM_LAYERS)
    params = {
        # embedding tables kept f32 (gather + sum happen in JAX glue)
        'word_emb': nrm(keys[0], (VOCAB, HIDDEN)),
        'pos_emb': nrm(keys[1], (MAX_POS, HIDDEN)),
        'type_emb': nrm(keys[2], (1, HIDDEN)),
        'emb_ln': ln_pair(),
        # matmul weights in bf16 (MXU-native); biases / LN params stay f32
        'cls_dense_w': nrm(keys[3], (HIDDEN, HIDDEN)).astype(jnp.bfloat16),
        'cls_dense_b': jnp.zeros((1, HIDDEN), jnp.float32),
    }
    # classifier output weight/bias, zero-padded on the lane axis to LOGIT_PAD
    w_out = nrm(keys[4], (HIDDEN, NUM_LABEL))
    params['cls_out_w'] = (jnp.zeros((HIDDEN, LOGIT_PAD), jnp.float32)
                           .at[:, :NUM_LABEL].set(w_out)).astype(jnp.bfloat16)
    params['cls_out_b'] = jnp.zeros((1, LOGIT_PAD), jnp.float32)

    wqkv, bqkv, wo, bo, ln1, w1, b1, w2, b2, ln2 = ([] for _ in range(10))
    for li in range(NUM_LAYERS):
        lk = jax.random.split(keys[5 + li], 6)
        wq, wk, wv = (nrm(lk[i], (HIDDEN, HIDDEN)) for i in range(3))
        # fused QKV, lane-padded from 3H=96 to 128 for dense vregs
        wqkv_l = jnp.concatenate([wq, wk, wv], axis=1)               # (H, 3H)
        wqkv_pad = (jnp.zeros((HIDDEN, QKV_PAD), jnp.float32)
                    .at[:, :3 * HIDDEN].set(wqkv_l))
        wqkv.append(wqkv_pad.astype(jnp.bfloat16))
        bqkv.append(jnp.zeros((1, QKV_PAD), jnp.float32))
        wo.append(nrm(lk[3], (HIDDEN, HIDDEN)).astype(jnp.bfloat16))
        bo.append(jnp.zeros((1, HIDDEN), jnp.float32))
        ln1.append(ln_pair())
        w1.append(nrm(lk[4], (HIDDEN, FFN)).astype(jnp.bfloat16))
        b1.append(jnp.zeros((1, FFN), jnp.float32))
        w2.append(nrm(lk[5], (FFN, HIDDEN)).astype(jnp.bfloat16))
        b2.append(jnp.zeros((1, HIDDEN), jnp.float32))
        ln2.append(ln_pair())

    params.update(
        wqkv=jnp.stack(wqkv), bqkv=jnp.stack(bqkv),
        wo=jnp.stack(wo), bo=jnp.stack(bo), ln1=jnp.stack(ln1),
        w1=jnp.stack(w1), b1=jnp.stack(b1),
        w2=jnp.stack(w2), b2=jnp.stack(b2), ln2=jnp.stack(ln2))
    return params


# ----------------------------- forward (glue + kernel) ------------------------
def roberta_classifier_forward(params, input_ids, attention_mask, labels=None):
    B, S = input_ids.shape
    # Embedding gathers stay in JAX glue (no clean vectorized Pallas gather here).
    # TODO(synk): HF XLM-RoBERTa offsets position ids by padding_idx+1 and gives
    # pad tokens the padding position; plain arange kept (no pretrained parity).
    word = params['word_emb'][input_ids]                       # (B, S, H)
    pos = params['pos_emb'][jnp.arange(S)][None, :, :]         # (1, S, H)
    tok = params['type_emb'][0][None, None, :]                 # (1, 1, H)
    emb = (word + pos + tok).astype(jnp.bfloat16)              # (B, S, H) bf16
    mask = attention_mask.astype(jnp.float32).reshape(B, 1, S)

    out_padded = fused_forward_pallas(emb, mask, params)       # (B, 1, 128)

    # CLS-row logits already selected in-kernel; slice the unpadded label lanes
    logits = out_padded[:, 0, :NUM_LABEL].astype(jnp.float32)  # (B, num_label)

    loss = None
    if labels is not None:
        # nn.CrossEntropyLoss (mean reduction) on a (B, num_label) tensor — JAX glue.
        logp = jax.nn.log_softmax(logits, axis=-1)
        loss = -jnp.mean(jnp.take_along_axis(logp, labels[:, None], axis=-1))
    return loss, logits


# ----------------------------- main -------------------------------------------
if __name__ == "__main__":
    key = jax.random.PRNGKey(0)
    pkey, ikey, lkey = jax.random.split(key, 3)

    params = init_params(pkey)

    B, S = 2, 8
    input_ids = jax.random.randint(ikey, (B, S), 0, VOCAB, dtype=jnp.int32)
    attention_mask = jnp.ones((B, S), dtype=jnp.int32).at[1, S - 2:].set(0)
    labels = jax.random.randint(lkey, (B,), 0, NUM_LABEL, dtype=jnp.int32)

    loss, logits = roberta_classifier_forward(params, input_ids, attention_mask, labels)
    jax.block_until_ready((loss, logits))

    assert logits.shape == (B, NUM_LABEL)
    assert loss.shape == ()
    print("KERNEL_OK")
</pallas_src>

<mosaic_0001>
module attributes {stable_mosaic.version = 11 : i64} {
  func.func @fused_forward_kernel(%arg0: i32, %arg1: memref<1x8x32xbf16, #tpu.memory_space<vmem>>, %arg2: memref<1x1x8xf32, #tpu.memory_space<vmem>>, %arg3: memref<2x32xf32, #tpu.memory_space<vmem>>, %arg4: memref<2x32x128xbf16, #tpu.memory_space<vmem>>, %arg5: memref<2x1x128xf32, #tpu.memory_space<vmem>>, %arg6: memref<2x32x32xbf16, #tpu.memory_space<vmem>>, %arg7: memref<2x1x32xf32, #tpu.memory_space<vmem>>, %arg8: memref<2x2x32xf32, #tpu.memory_space<vmem>>, %arg9: memref<2x32x64xbf16, #tpu.memory_space<vmem>>, %arg10: memref<2x1x64xf32, #tpu.memory_space<vmem>>, %arg11: memref<2x64x32xbf16, #tpu.memory_space<vmem>>, %arg12: memref<2x1x32xf32, #tpu.memory_space<vmem>>, %arg13: memref<2x2x32xf32, #tpu.memory_space<vmem>>, %arg14: memref<32x32xbf16, #tpu.memory_space<vmem>>, %arg15: memref<1x32xf32, #tpu.memory_space<vmem>>, %arg16: memref<32x128xbf16, #tpu.memory_space<vmem>>, %arg17: memref<1x128xf32, #tpu.memory_space<vmem>>, %arg18: memref<1x1x128xf32, #tpu.memory_space<vmem>>) attributes {dimension_semantics = [#tpu.dimension_semantics<parallel>], iteration_bounds = array<i64: 2>, scalar_prefetch = 0 : i64, scratch_operands = 0 : i64, tpu.core_type = #tpu.core_type<tc>, window_params = [{transform_indices = @transform_0, window_bounds = array<i64: 1, 8, 32>}, {transform_indices = @transform_1, window_bounds = array<i64: 1, 1, 8>}, {pipeline_mode = #tpu.pipeline_mode<synchronous>, transform_indices = @transform_2, window_bounds = array<i64: 2, 32>}, {pipeline_mode = #tpu.pipeline_mode<synchronous>, transform_indices = @transform_3, window_bounds = array<i64: 2, 32, 128>}, {pipeline_mode = #tpu.pipeline_mode<synchronous>, transform_indices = @transform_4, window_bounds = array<i64: 2, 1, 128>}, {pipeline_mode = #tpu.pipeline_mode<synchronous>, transform_indices = @transform_5, window_bounds = array<i64: 2, 32, 32>}, {pipeline_mode = #tpu.pipeline_mode<synchronous>, transform_indices = @transform_6, window_bounds = array<i64: 2, 1, 32>}, {pipeline_mode = #tpu.pipeline_mode<synchronous>, transform_indices = @transform_7, window_bounds = array<i64: 2, 2, 32>}, {pipeline_mode = #tpu.pipeline_mode<synchronous>, transform_indices = @transform_8, window_bounds = array<i64: 2, 32, 64>}, {pipeline_mode = #tpu.pipeline_mode<synchronous>, transform_indices = @transform_9, window_bounds = array<i64: 2, 1, 64>}, {pipeline_mode = #tpu.pipeline_mode<synchronous>, transform_indices = @transform_10, window_bounds = array<i64: 2, 64, 32>}, {pipeline_mode = #tpu.pipeline_mode<synchronous>, transform_indices = @transform_11, window_bounds = array<i64: 2, 1, 32>}, {pipeline_mode = #tpu.pipeline_mode<synchronous>, transform_indices = @transform_12, window_bounds = array<i64: 2, 2, 32>}, {pipeline_mode = #tpu.pipeline_mode<synchronous>, transform_indices = @transform_13, window_bounds = array<i64: 32, 32>}, {pipeline_mode = #tpu.pipeline_mode<synchronous>, transform_indices = @transform_14, window_bounds = array<i64: 1, 32>}, {pipeline_mode = #tpu.pipeline_mode<synchronous>, transform_indices = @transform_15, window_bounds = array<i64: 32, 128>}, {pipeline_mode = #tpu.pipeline_mode<synchronous>, transform_indices = @transform_16, window_bounds = array<i64: 1, 128>}, {transform_indices = @transform_17, window_bounds = array<i64: 1, 1, 128>}]} {
    %c0 = arith.constant 0 : index
    %c0_0 = arith.constant 0 : index
    %c0_1 = arith.constant 0 : index
    %0 = vector.load %arg2[%c0, %c0_0, %c0_1] : memref<1x1x8xf32, #tpu.memory_space<vmem>>, vector<1x1x8xf32>
    %1 = vector.shape_cast %0 : vector<1x1x8xf32> to vector<1x8xf32>
    %cst = arith.constant 5.000000e-01 : f32
    %2 = vector.broadcast %cst : f32 to vector<1x8xf32>
    %3 = arith.cmpf ogt, %1, %2 : vector<1x8xf32>
    %cst_2 = arith.constant 0.000000e+00 : f32
    %cst_3 = arith.constant -1.000000e+09 : f32
    %4 = vector.broadcast %cst_2 : f32 to vector<1x8xf32>
    %5 = vector.broadcast %cst_3 : f32 to vector<1x8xf32>
    %6 = arith.select %3, %4, %5 : vector<1x8xi1>, vector<1x8xf32>
    %c0_4 = arith.constant 0 : index
    %c0_5 = arith.constant 0 : index
    %7 = vector.load %arg3[%c0_4, %c0_5] : memref<2x32xf32, #tpu.memory_space<vmem>>, vector<2x32xf32>
    %c0_6 = arith.constant 0 : index
    %c0_7 = arith.constant 0 : index
    %c0_8 = arith.constant 0 : index
    %8 = vector.load %arg1[%c0_6, %c0_7, %c0_8] : memref<1x8x32xbf16, #tpu.memory_space<vmem>>, vector<1x8x32xbf16>
    %9 = vector.shape_cast %8 : vector<1x8x32xbf16> to vector<8x32xbf16>
    %10 = arith.extf %9 : vector<8x32xbf16> to vector<8x32xf32>
    %11 = vector.extract_strided_slice %7 {offsets = [0, 0], sizes = [1, 32], strides = [1, 1]} : vector<2x32xf32> to vector<1x32xf32>
    %12 = vector.extract_strided_slice %7 {offsets = [1, 0], sizes = [1, 32], strides = [1, 1]} : vector<2x32xf32> to vector<1x32xf32>
    %cst_9 = arith.constant dense<0.000000e+00> : vector<8xf32>
    %13 = vector.multi_reduction <add>, %10, %cst_9 [1] : vector<8x32xf32> to vector<8xf32>
    %14 = vector.shape_cast %13 : vector<8xf32> to vector<8x1xf32>
    %cst_10 = arith.constant 3.200000e+01 : f32
    %15 = vector.broadcast %cst_10 : f32 to vector<8x1xf32>
    %16 = arith.divf %14, %15 : vector<8x1xf32>
    %17 = arith.mulf %10, %10 : vector<8x32xf32>
    %cst_11 = arith.constant dense<0.000000e+00> : vector<8xf32>
    %18 = vector.multi_reduction <add>, %17, %cst_11 [1] : vector<8x32xf32> to vector<8xf32>
    %19 = vector.shape_cast %18 : vector<8xf32> to vector<8x1xf32>
    %cst_12 = arith.constant 3.200000e+01 : f32
    %20 = vector.broadcast %cst_12 : f32 to vector<8x1xf32>
    %21 = arith.divf %19, %20 : vector<8x1xf32>
    %22 = arith.mulf %16, %16 : vector<8x1xf32>
    %23 = arith.subf %21, %22 : vector<8x1xf32>
    %24 = vector.broadcast %16 : vector<8x1xf32> to vector<8x32xf32>
    %25 = arith.subf %10, %24 : vector<8x32xf32>
    %cst_13 = arith.constant 9.99999974E-6 : f32
    %26 = vector.broadcast %cst_13 : f32 to vector<8x1xf32>
    %27 = arith.addf %23, %26 : vector<8x1xf32>
    %28 = math.rsqrt %27 : vector<8x1xf32>
    %29 = vector.broadcast %28 : vector<8x1xf32> to vector<8x32xf32>
    %30 = arith.mulf %25, %29 : vector<8x32xf32>
    %31 = vector.broadcast %11 : vector<1x32xf32> to vector<8x32xf32>
    %32 = arith.mulf %30, %31 : vector<8x32xf32>
    %33 = vector.broadcast %12 : vector<1x32xf32> to vector<8x32xf32>
    %34 = arith.addf %32, %33 : vector<8x32xf32>
    %35 = arith.truncf %34 : vector<8x32xf32> to vector<8x32xbf16>
    %c0_14 = arith.constant 0 : index
    %c0_15 = arith.constant 0 : index
    %c0_16 = arith.constant 0 : index
    %36 = vector.load %arg4[%c0_14, %c0_15, %c0_16] : memref<2x32x128xbf16, #tpu.memory_space<vmem>>, vector<1x32x128xbf16>
    %37 = vector.shape_cast %36 : vector<1x32x128xbf16> to vector<32x128xbf16>
    %cst_17 = arith.constant dense<0.000000e+00> : vector<8x128xf32>
    %38 = tpu.matmul %35, %37, %cst_17 {dimension_numbers = #tpu.dot_dimension_numbers<[1], [0], [0], [1], [0, 0, 1, 1], [], []>} : vector<8x32xbf16>, vector<32x128xbf16>, vector<8x128xf32> -> vector<8x128xf32>
    %c0_18 = arith.constant 0 : index
    %c0_19 = arith.constant 0 : index
    %c0_20 = arith.constant 0 : index
    %39 = vector.load %arg5[%c0_18, %c0_19, %c0_20] : memref<2x1x128xf32, #tpu.memory_space<vmem>>, vector<1x1x128xf32>
    %40 = vector.shape_cast %39 : vector<1x1x128xf32> to vector<1x128xf32>
    %41 = vector.broadcast %40 : vector<1x128xf32> to vector<8x128xf32>
    %42 = arith.addf %38, %41 : vector<8x128xf32>
    %43 = vector.extract_strided_slice %42 {offsets = [0, 0], sizes = [8, 16], strides = [1, 1]} : vector<8x128xf32> to vector<8x16xf32>
    %44 = vector.extract_strided_slice %42 {offsets = [0, 32], sizes = [8, 16], strides = [1, 1]} : vector<8x128xf32> to vector<8x16xf32>
    %45 = vector.extract_strided_slice %42 {offsets = [0, 64], sizes = [8, 16], strides = [1, 1]} : vector<8x128xf32> to vector<8x16xf32>
    %46 = arith.truncf %43 : vector<8x16xf32> to vector<8x16xbf16>
    %47 = arith.truncf %44 : vector<8x16xf32> to vector<8x16xbf16>
    %cst_21 = arith.constant dense<0.000000e+00> : vector<8x8xf32>
    %48 = tpu.matmul %46, %47, %cst_21 {dimension_numbers = #tpu.dot_dimension_numbers<[1], [1], [0], [0], [0, 0, 1, 0], [], []>} : vector<8x16xbf16>, vector<8x16xbf16>, vector<8x8xf32> -> vector<8x8xf32>
    %cst_22 = arith.constant 2.500000e-01 : f32
    %49 = vector.broadcast %cst_22 : f32 to vector<8x8xf32>
    %50 = arith.mulf %48, %49 : vector<8x8xf32>
    %51 = vector.broadcast %6 : vector<1x8xf32> to vector<8x8xf32>
    %52 = arith.addf %50, %51 : vector<8x8xf32>
    %cst_23 = arith.constant dense<0xFF800000> : vector<8xf32>
    %53 = vector.multi_reduction <maximumf>, %52, %cst_23 [1] : vector<8x8xf32> to vector<8xf32>
    %54 = vector.shape_cast %53 : vector<8xf32> to vector<8x1xf32>
    %55 = vector.broadcast %54 : vector<8x1xf32> to vector<8x8xf32>
    %56 = arith.subf %52, %55 : vector<8x8xf32>
    %57 = math.exp %56 : vector<8x8xf32>
    %cst_24 = arith.constant dense<0.000000e+00> : vector<8xf32>
    %58 = vector.multi_reduction <add>, %57, %cst_24 [1] : vector<8x8xf32> to vector<8xf32>
    %59 = vector.shape_cast %58 : vector<8xf32> to vector<8x1xf32>
    %60 = tpu.reciprocal %59 {approx = true} : vector<8x1xf32> -> vector<8x1xf32>
    %61 = vector.broadcast %60 : vector<8x1xf32> to vector<8x8xf32>
    %62 = arith.mulf %57, %61 : vector<8x8xf32>
    %63 = arith.truncf %62 : vector<8x8xf32> to vector<8x8xbf16>
    %64 = arith.truncf %45 : vector<8x16xf32> to vector<8x16xbf16>
    %cst_25 = arith.constant dense<0.000000e+00> : vector<8x16xf32>
    %65 = tpu.matmul %63, %64, %cst_25 {dimension_numbers = #tpu.dot_dimension_numbers<[1], [0], [0], [1], [0, 0, 1, 1], [], []>} : vector<8x8xbf16>, vector<8x16xbf16>, vector<8x16xf32> -> vector<8x16xf32>
    %66 = vector.extract_strided_slice %42 {offsets = [0, 16], sizes = [8, 16], strides = [1, 1]} : vector<8x128xf32> to vector<8x16xf32>
    %67 = vector.extract_strided_slice %42 {offsets = [0, 48], sizes = [8, 16], strides = [1, 1]} : vector<8x128xf32> to vector<8x16xf32>
    %68 = vector.extract_strided_slice %42 {offsets = [0, 80], sizes = [8, 16], strides = [1, 1]} : vector<8x128xf32> to vector<8x16xf32>
    %69 = arith.truncf %66 : vector<8x16xf32> to vector<8x16xbf16>
    %70 = arith.truncf %67 : vector<8x16xf32> to vector<8x16xbf16>
    %cst_26 = arith.constant dense<0.000000e+00> : vector<8x8xf32>
    %71 = tpu.matmul %69, %70, %cst_26 {dimension_numbers = #tpu.dot_dimension_numbers<[1], [1], [0], [0], [0, 0, 1, 0], [], []>} : vector<8x16xbf16>, vector<8x16xbf16>, vector<8x8xf32> -> vector<8x8xf32>
    %cst_27 = arith.constant 2.500000e-01 : f32
    %72 = vector.broadcast %cst_27 : f32 to vector<8x8xf32>
    %73 = arith.mulf %71, %72 : vector<8x8xf32>
    %74 = vector.broadcast %6 : vector<1x8xf32> to vector<8x8xf32>
    %75 = arith.addf %73, %74 : vector<8x8xf32>
    %cst_28 = arith.constant dense<0xFF800000> : vector<8xf32>
    %76 = vector.multi_reduction <maximumf>, %75, %cst_28 [1] : vector<8x8xf32> to vector<8xf32>
    %77 = vector.shape_cast %76 : vector<8xf32> to vector<8x1xf32>
    %78 = vector.broadcast %77 : vector<8x1xf32> to vector<8x8xf32>
    %79 = arith.subf %75, %78 : vector<8x8xf32>
    %80 = math.exp %79 : vector<8x8xf32>
    %cst_29 = arith.constant dense<0.000000e+00> : vector<8xf32>
    %81 = vector.multi_reduction <add>, %80, %cst_29 [1] : vector<8x8xf32> to vector<8xf32>
    %82 = vector.shape_cast %81 : vector<8xf32> to vector<8x1xf32>
    %83 = tpu.reciprocal %82 {approx = true} : vector<8x1xf32> -> vector<8x1xf32>
    %84 = vector.broadcast %83 : vector<8x1xf32> to vector<8x8xf32>
    %85 = arith.mulf %80, %84 : vector<8x8xf32>
    %86 = arith.truncf %85 : vector<8x8xf32> to vector<8x8xbf16>
    %87 = arith.truncf %68 : vector<8x16xf32> to vector<8x16xbf16>
    %cst_30 = arith.constant dense<0.000000e+00> : vector<8x16xf32>
    %88 = tpu.matmul %86, %87, %cst_30 {dimension_numbers = #tpu.dot_dimension_numbers<[1], [0], [0], [1], [0, 0, 1, 1], [], []>} : vector<8x8xbf16>, vector<8x16xbf16>, vector<8x16xf32> -> vector<8x16xf32>
    %89 = tpu.concatenate %65, %88 in 1 : vector<8x16xf32>, vector<8x16xf32> -> vector<8x32xf32>
    %90 = arith.truncf %89 : vector<8x32xf32> to vector<8x32xbf16>
    %c0_31 = arith.constant 0 : index
    %c0_32 = arith.constant 0 : index
    %c0_33 = arith.constant 0 : index
    %91 = vector.load %arg6[%c0_31, %c0_32, %c0_33] : memref<2x32x32xbf16, #tpu.memory_space<vmem>>, vector<1x32x32xbf16>
    %92 = vector.shape_cast %91 : vector<1x32x32xbf16> to vector<32x32xbf16>
    %cst_34 = arith.constant dense<0.000000e+00> : vector<8x32xf32>
    %93 = tpu.matmul %90, %92, %cst_34 {dimension_numbers = #tpu.dot_dimension_numbers<[1], [0], [0], [1], [0, 0, 1, 1], [], []>} : vector<8x32xbf16>, vector<32x32xbf16>, vector<8x32xf32> -> vector<8x32xf32>
    %c0_35 = arith.constant 0 : index
    %c0_36 = arith.constant 0 : index
    %c0_37 = arith.constant 0 : index
    %94 = vector.load %arg7[%c0_35, %c0_36, %c0_37] : memref<2x1x32xf32, #tpu.memory_space<vmem>>, vector<1x1x32xf32>
    %95 = vector.shape_cast %94 : vector<1x1x32xf32> to vector<1x32xf32>
    %96 = vector.broadcast %95 : vector<1x32xf32> to vector<8x32xf32>
    %97 = arith.addf %93, %96 : vector<8x32xf32>
    %c0_38 = arith.constant 0 : index
    %c0_39 = arith.constant 0 : index
    %c0_40 = arith.constant 0 : index
    %98 = vector.load %arg8[%c0_38, %c0_39, %c0_40] : memref<2x2x32xf32, #tpu.memory_space<vmem>>, vector<1x2x32xf32>
    %99 = vector.shape_cast %98 : vector<1x2x32xf32> to vector<2x32xf32>
    %100 = arith.addf %34, %97 : vector<8x32xf32>
    %101 = vector.extract_strided_slice %99 {offsets = [0, 0], sizes = [1, 32], strides = [1, 1]} : vector<2x32xf32> to vector<1x32xf32>
    %102 = vector.extract_strided_slice %99 {offsets = [1, 0], sizes = [1, 32], strides = [1, 1]} : vector<2x32xf32> to vector<1x32xf32>
    %cst_41 = arith.constant dense<0.000000e+00> : vector<8xf32>
    %103 = vector.multi_reduction <add>, %100, %cst_41 [1] : vector<8x32xf32> to vector<8xf32>
    %104 = vector.shape_cast %103 : vector<8xf32> to vector<8x1xf32>
    %cst_42 = arith.constant 3.200000e+01 : f32
    %105 = vector.broadcast %cst_42 : f32 to vector<8x1xf32>
    %106 = arith.divf %104, %105 : vector<8x1xf32>
    %107 = arith.mulf %100, %100 : vector<8x32xf32>
    %cst_43 = arith.constant dense<0.000000e+00> : vector<8xf32>
    %108 = vector.multi_reduction <add>, %107, %cst_43 [1] : vector<8x32xf32> to vector<8xf32>
    %109 = vector.shape_cast %108 : vector<8xf32> to vector<8x1xf32>
    %cst_44 = arith.constant 3.200000e+01 : f32
    %110 = vector.broadcast %cst_44 : f32 to vector<8x1xf32>
    %111 = arith.divf %109, %110 : vector<8x1xf32>
    %112 = arith.mulf %106, %106 : vector<8x1xf32>
    %113 = arith.subf %111, %112 : vector<8x1xf32>
    %114 = vector.broadcast %106 : vector<8x1xf32> to vector<8x32xf32>
    %115 = arith.subf %100, %114 : vector<8x32xf32>
    %cst_45 = arith.constant 9.99999974E-6 : f32
    %116 = vector.broadcast %cst_45 : f32 to vector<8x1xf32>
    %117 = arith.addf %113, %116 : vector<8x1xf32>
    %118 = math.rsqrt %117 : vector<8x1xf32>
    %119 = vector.broadcast %118 : vector<8x1xf32> to vector<8x32xf32>
    %120 = arith.mulf %115, %119 : vector<8x32xf32>
    %121 = vector.broadcast %101 : vector<1x32xf32> to vector<8x32xf32>
    %122 = arith.mulf %120, %121 : vector<8x32xf32>
    %123 = vector.broadcast %102 : vector<1x32xf32> to vector<8x32xf32>
    %124 = arith.addf %122, %123 : vector<8x32xf32>
    %125 = arith.truncf %124 : vector<8x32xf32> to vector<8x32xbf16>
    %c0_46 = arith.constant 0 : index
    %c0_47 = arith.constant 0 : index
    %c0_48 = arith.constant 0 : index
    %126 = vector.load %arg9[%c0_46, %c0_47, %c0_48] : memref<2x32x64xbf16, #tpu.memory_space<vmem>>, vector<1x32x64xbf16>
    %127 = vector.shape_cast %126 : vector<1x32x64xbf16> to vector<32x64xbf16>
    %cst_49 = arith.constant dense<0.000000e+00> : vector<8x64xf32>
    %128 = tpu.matmul %125, %127, %cst_49 {dimension_numbers = #tpu.dot_dimension_numbers<[1], [0], [0], [1], [0, 0, 1, 1], [], []>} : vector<8x32xbf16>, vector<32x64xbf16>, vector<8x64xf32> -> vector<8x64xf32>
    %c0_50 = arith.constant 0 : index
    %c0_51 = arith.constant 0 : index
    %c0_52 = arith.constant 0 : index
    %129 = vector.load %arg10[%c0_50, %c0_51, %c0_52] : memref<2x1x64xf32, #tpu.memory_space<vmem>>, vector<1x1x64xf32>
    %130 = vector.shape_cast %129 : vector<1x1x64xf32> to vector<1x64xf32>
    %131 = vector.broadcast %130 : vector<1x64xf32> to vector<8x64xf32>
    %132 = arith.addf %128, %131 : vector<8x64xf32>
    %cst_53 = arith.constant 5.000000e-01 : f32
    %133 = vector.broadcast %cst_53 : f32 to vector<8x64xf32>
    %134 = arith.mulf %133, %132 : vector<8x64xf32>
    %cst_54 = arith.constant 4.471500e-02 : f32
    %135 = vector.broadcast %cst_54 : f32 to vector<8x64xf32>
    %136 = arith.mulf %135, %132 : vector<8x64xf32>
    %137 = arith.mulf %136, %132 : vector<8x64xf32>
    %138 = arith.mulf %137, %132 : vector<8x64xf32>
    %139 = arith.addf %132, %138 : vector<8x64xf32>
    %cst_55 = arith.constant 0.797884583 : f32
    %140 = vector.broadcast %cst_55 : f32 to vector<8x64xf32>
    %141 = arith.mulf %140, %139 : vector<8x64xf32>
    %142 = math.tanh %141 : vector<8x64xf32>
    %cst_56 = arith.constant 1.000000e+00 : f32
    %143 = vector.broadcast %cst_56 : f32 to vector<8x64xf32>
    %144 = arith.addf %143, %142 : vector<8x64xf32>
    %145 = arith.mulf %134, %144 : vector<8x64xf32>
    %146 = arith.truncf %145 : vector<8x64xf32> to vector<8x64xbf16>
    %c0_57 = arith.constant 0 : index
    %c0_58 = arith.constant 0 : index
    %c0_59 = arith.constant 0 : index
    %147 = vector.load %arg11[%c0_57, %c0_58, %c0_59] : memref<2x64x32xbf16, #tpu.memory_space<vmem>>, vector<1x64x32xbf16>
    %148 = vector.shape_cast %147 : vector<1x64x32xbf16> to vector<64x32xbf16>
    %cst_60 = arith.constant dense<0.000000e+00> : vector<8x32xf32>
    %149 = tpu.matmul %146, %148, %cst_60 {dimension_numbers = #tpu.dot_dimension_numbers<[1], [0], [0], [1], [0, 0, 1, 1], [], []>} : vector<8x64xbf16>, vector<64x32xbf16>, vector<8x32xf32> -> vector<8x32xf32>
    %c0_61 = arith.constant 0 : index
    %c0_62 = arith.constant 0 : index
    %c0_63 = arith.constant 0 : index
    %150 = vector.load %arg12[%c0_61, %c0_62, %c0_63] : memref<2x1x32xf32, #tpu.memory_space<vmem>>, vector<1x1x32xf32>
    %151 = vector.shape_cast %150 : vector<1x1x32xf32> to vector<1x32xf32>
    %152 = vector.broadcast %151 : vector<1x32xf32> to vector<8x32xf32>
    %153 = arith.addf %149, %152 : vector<8x32xf32>
    %c0_64 = arith.constant 0 : index
    %c0_65 = arith.constant 0 : index
    %c0_66 = arith.constant 0 : index
    %154 = vector.load %arg13[%c0_64, %c0_65, %c0_66] : memref<2x2x32xf32, #tpu.memory_space<vmem>>, vector<1x2x32xf32>
    %155 = vector.shape_cast %154 : vector<1x2x32xf32> to vector<2x32xf32>
    %156 = arith.addf %124, %153 : vector<8x32xf32>
    %157 = vector.extract_strided_slice %155 {offsets = [0, 0], sizes = [1, 32], strides = [1, 1]} : vector<2x32xf32> to vector<1x32xf32>
    %158 = vector.extract_strided_slice %155 {offsets = [1, 0], sizes = [1, 32], strides = [1, 1]} : vector<2x32xf32> to vector<1x32xf32>
    %cst_67 = arith.constant dense<0.000000e+00> : vector<8xf32>
    %159 = vector.multi_reduction <add>, %156, %cst_67 [1] : vector<8x32xf32> to vector<8xf32>
    %160 = vector.shape_cast %159 : vector<8xf32> to vector<8x1xf32>
    %cst_68 = arith.constant 3.200000e+01 : f32
    %161 = vector.broadcast %cst_68 : f32 to vector<8x1xf32>
    %162 = arith.divf %160, %161 : vector<8x1xf32>
    %163 = arith.mulf %156, %156 : vector<8x32xf32>
    %cst_69 = arith.constant dense<0.000000e+00> : vector<8xf32>
    %164 = vector.multi_reduction <add>, %163, %cst_69 [1] : vector<8x32xf32> to vector<8xf32>
    %165 = vector.shape_cast %164 : vector<8xf32> to vector<8x1xf32>
    %cst_70 = arith.constant 3.200000e+01 : f32
    %166 = vector.broadcast %cst_70 : f32 to vector<8x1xf32>
    %167 = arith.divf %165, %166 : vector<8x1xf32>
    %168 = arith.mulf %162, %162 : vector<8x1xf32>
    %169 = arith.subf %167, %168 : vector<8x1xf32>
    %170 = vector.broadcast %162 : vector<8x1xf32> to vector<8x32xf32>
    %171 = arith.subf %156, %170 : vector<8x32xf32>
    %cst_71 = arith.constant 9.99999974E-6 : f32
    %172 = vector.broadcast %cst_71 : f32 to vector<8x1xf32>
    %173 = arith.addf %169, %172 : vector<8x1xf32>
    %174 = math.rsqrt %173 : vector<8x1xf32>
    %175 = vector.broadcast %174 : vector<8x1xf32> to vector<8x32xf32>
    %176 = arith.mulf %171, %175 : vector<8x32xf32>
    %177 = vector.broadcast %157 : vector<1x32xf32> to vector<8x32xf32>
    %178 = arith.mulf %176, %177 : vector<8x32xf32>
    %179 = vector.broadcast %158 : vector<1x32xf32> to vector<8x32xf32>
    %180 = arith.addf %178, %179 : vector<8x32xf32>
    %181 = arith.truncf %180 : vector<8x32xf32> to vector<8x32xbf16>
    %c1 = arith.constant 1 : index
    %c0_72 = arith.constant 0 : index
    %c0_73 = arith.constant 0 : index
    %182 = vector.load %arg4[%c1, %c0_72, %c0_73] : memref<2x32x128xbf16, #tpu.memory_space<vmem>>, vector<1x32x128xbf16>
    %183 = vector.shape_cast %182 : vector<1x32x128xbf16> to vector<32x128xbf16>
    %cst_74 = arith.constant dense<0.000000e+00> : vector<8x128xf32>
    %184 = tpu.matmul %181, %183, %cst_74 {dimension_numbers = #tpu.dot_dimension_numbers<[1], [0], [0], [1], [0, 0, 1, 1], [], []>} : vector<8x32xbf16>, vector<32x128xbf16>, vector<8x128xf32> -> vector<8x128xf32>
    %c1_75 = arith.constant 1 : index
    %c0_76 = arith.constant 0 : index
    %c0_77 = arith.constant 0 : index
    %185 = vector.load %arg5[%c1_75, %c0_76, %c0_77] : memref<2x1x128xf32, #tpu.memory_space<vmem>>, vector<1x1x128xf32>
    %186 = vector.shape_cast %185 : vector<1x1x128xf32> to vector<1x128xf32>
    %187 = vector.broadcast %186 : vector<1x128xf32> to vector<8x128xf32>
    %188 = arith.addf %184, %187 : vector<8x128xf32>
    %189 = vector.extract_strided_slice %188 {offsets = [0, 0], sizes = [8, 16], strides = [1, 1]} : vector<8x128xf32> to vector<8x16xf32>
    %190 = vector.extract_strided_slice %188 {offsets = [0, 32], sizes = [8, 16], strides = [1, 1]} : vector<8x128xf32> to vector<8x16xf32>
    %191 = vector.extract_strided_slice %188 {offsets = [0, 64], sizes = [8, 16], strides = [1, 1]} : vector<8x128xf32> to vector<8x16xf32>
    %192 = arith.truncf %189 : vector<8x16xf32> to vector<8x16xbf16>
    %193 = arith.truncf %190 : vector<8x16xf32> to vector<8x16xbf16>
    %cst_78 = arith.constant dense<0.000000e+00> : vector<8x8xf32>
    %194 = tpu.matmul %192, %193, %cst_78 {dimension_numbers = #tpu.dot_dimension_numbers<[1], [1], [0], [0], [0, 0, 1, 0], [], []>} : vector<8x16xbf16>, vector<8x16xbf16>, vector<8x8xf32> -> vector<8x8xf32>
    %cst_79 = arith.constant 2.500000e-01 : f32
    %195 = vector.broadcast %cst_79 : f32 to vector<8x8xf32>
    %196 = arith.mulf %194, %195 : vector<8x8xf32>
    %197 = vector.broadcast %6 : vector<1x8xf32> to vector<8x8xf32>
    %198 = arith.addf %196, %197 : vector<8x8xf32>
    %cst_80 = arith.constant dense<0xFF800000> : vector<8xf32>
    %199 = vector.multi_reduction <maximumf>, %198, %cst_80 [1] : vector<8x8xf32> to vector<8xf32>
    %200 = vector.shape_cast %199 : vector<8xf32> to vector<8x1xf32>
    %201 = vector.broadcast %200 : vector<8x1xf32> to vector<8x8xf32>
    %202 = arith.subf %198, %201 : vector<8x8xf32>
    %203 = math.exp %202 : vector<8x8xf32>
    %cst_81 = arith.constant dense<0.000000e+00> : vector<8xf32>
    %204 = vector.multi_reduction <add>, %203, %cst_81 [1] : vector<8x8xf32> to vector<8xf32>
    %205 = vector.shape_cast %204 : vector<8xf32> to vector<8x1xf32>
    %206 = tpu.reciprocal %205 {approx = true} : vector<8x1xf32> -> vector<8x1xf32>
    %207 = vector.broadcast %206 : vector<8x1xf32> to vector<8x8xf32>
    %208 = arith.mulf %203, %207 : vector<8x8xf32>
    %209 = arith.truncf %208 : vector<8x8xf32> to vector<8x8xbf16>
    %210 = arith.truncf %191 : vector<8x16xf32> to vector<8x16xbf16>
    %cst_82 = arith.constant dense<0.000000e+00> : vector<8x16xf32>
    %211 = tpu.matmul %209, %210, %cst_82 {dimension_numbers = #tpu.dot_dimension_numbers<[1], [0], [0], [1], [0, 0, 1, 1], [], []>} : vector<8x8xbf16>, vector<8x16xbf16>, vector<8x16xf32> -> vector<8x16xf32>
    %212 = vector.extract_strided_slice %188 {offsets = [0, 16], sizes = [8, 16], strides = [1, 1]} : vector<8x128xf32> to vector<8x16xf32>
    %213 = vector.extract_strided_slice %188 {offsets = [0, 48], sizes = [8, 16], strides = [1, 1]} : vector<8x128xf32> to vector<8x16xf32>
    %214 = vector.extract_strided_slice %188 {offsets = [0, 80], sizes = [8, 16], strides = [1, 1]} : vector<8x128xf32> to vector<8x16xf32>
    %215 = arith.truncf %212 : vector<8x16xf32> to vector<8x16xbf16>
    %216 = arith.truncf %213 : vector<8x16xf32> to vector<8x16xbf16>
    %cst_83 = arith.constant dense<0.000000e+00> : vector<8x8xf32>
    %217 = tpu.matmul %215, %216, %cst_83 {dimension_numbers = #tpu.dot_dimension_numbers<[1], [1], [0], [0], [0, 0, 1, 0], [], []>} : vector<8x16xbf16>, vector<8x16xbf16>, vector<8x8xf32> -> vector<8x8xf32>
    %cst_84 = arith.constant 2.500000e-01 : f32
    %218 = vector.broadcast %cst_84 : f32 to vector<8x8xf32>
    %219 = arith.mulf %217, %218 : vector<8x8xf32>
    %220 = vector.broadcast %6 : vector<1x8xf32> to vector<8x8xf32>
    %221 = arith.addf %219, %220 : vector<8x8xf32>
    %cst_85 = arith.constant dense<0xFF800000> : vector<8xf32>
    %222 = vector.multi_reduction <maximumf>, %221, %cst_85 [1] : vector<8x8xf32> to vector<8xf32>
    %223 = vector.shape_cast %222 : vector<8xf32> to vector<8x1xf32>
    %224 = vector.broadcast %223 : vector<8x1xf32> to vector<8x8xf32>
    %225 = arith.subf %221, %224 : vector<8x8xf32>
    %226 = math.exp %225 : vector<8x8xf32>
    %cst_86 = arith.constant dense<0.000000e+00> : vector<8xf32>
    %227 = vector.multi_reduction <add>, %226, %cst_86 [1] : vector<8x8xf32> to vector<8xf32>
    %228 = vector.shape_cast %227 : vector<8xf32> to vector<8x1xf32>
    %229 = tpu.reciprocal %228 {approx = true} : vector<8x1xf32> -> vector<8x1xf32>
    %230 = vector.broadcast %229 : vector<8x1xf32> to vector<8x8xf32>
    %231 = arith.mulf %226, %230 : vector<8x8xf32>
    %232 = arith.truncf %231 : vector<8x8xf32> to vector<8x8xbf16>
    %233 = arith.truncf %214 : vector<8x16xf32> to vector<8x16xbf16>
    %cst_87 = arith.constant dense<0.000000e+00> : vector<8x16xf32>
    %234 = tpu.matmul %232, %233, %cst_87 {dimension_numbers = #tpu.dot_dimension_numbers<[1], [0], [0], [1], [0, 0, 1, 1], [], []>} : vector<8x8xbf16>, vector<8x16xbf16>, vector<8x16xf32> -> vector<8x16xf32>
    %235 = tpu.concatenate %211, %234 in 1 : vector<8x16xf32>, vector<8x16xf32> -> vector<8x32xf32>
    %236 = arith.truncf %235 : vector<8x32xf32> to vector<8x32xbf16>
    %c1_88 = arith.constant 1 : index
    %c0_89 = arith.constant 0 : index
    %c0_90 = arith.constant 0 : index
    %237 = vector.load %arg6[%c1_88, %c0_89, %c0_90] : memref<2x32x32xbf16, #tpu.memory_space<vmem>>, vector<1x32x32xbf16>
    %238 = vector.shape_cast %237 : vector<1x32x32xbf16> to vector<32x32xbf16>
    %cst_91 = arith.constant dense<0.000000e+00> : vector<8x32xf32>
    %239 = tpu.matmul %236, %238, %cst_91 {dimension_numbers = #tpu.dot_dimension_numbers<[1], [0], [0], [1], [0, 0, 1, 1], [], []>} : vector<8x32xbf16>, vector<32x32xbf16>, vector<8x32xf32> -> vector<8x32xf32>
    %c1_92 = arith.constant 1 : index
    %c0_93 = arith.constant 0 : index
    %c0_94 = arith.constant 0 : index
    %240 = vector.load %arg7[%c1_92, %c0_93, %c0_94] : memref<2x1x32xf32, #tpu.memory_space<vmem>>, vector<1x1x32xf32>
    %241 = vector.shape_cast %240 : vector<1x1x32xf32> to vector<1x32xf32>
    %242 = vector.broadcast %241 : vector<1x32xf32> to vector<8x32xf32>
    %243 = arith.addf %239, %242 : vector<8x32xf32>
    %c1_95 = arith.constant 1 : index
    %c0_96 = arith.constant 0 : index
    %c0_97 = arith.constant 0 : index
    %244 = vector.load %arg8[%c1_95, %c0_96, %c0_97] : memref<2x2x32xf32, #tpu.memory_space<vmem>>, vector<1x2x32xf32>
    %245 = vector.shape_cast %244 : vector<1x2x32xf32> to vector<2x32xf32>
    %246 = arith.addf %180, %243 : vector<8x32xf32>
    %247 = vector.extract_strided_slice %245 {offsets = [0, 0], sizes = [1, 32], strides = [1, 1]} : vector<2x32xf32> to vector<1x32xf32>
    %248 = vector.extract_strided_slice %245 {offsets = [1, 0], sizes = [1, 32], strides = [1, 1]} : vector<2x32xf32> to vector<1x32xf32>
    %cst_98 = arith.constant dense<0.000000e+00> : vector<8xf32>
    %249 = vector.multi_reduction <add>, %246, %cst_98 [1] : vector<8x32xf32> to vector<8xf32>
    %250 = vector.shape_cast %249 : vector<8xf32> to vector<8x1xf32>
    %cst_99 = arith.constant 3.200000e+01 : f32
    %251 = vector.broadcast %cst_99 : f32 to vector<8x1xf32>
    %252 = arith.divf %250, %251 : vector<8x1xf32>
    %253 = arith.mulf %246, %246 : vector<8x32xf32>
    %cst_100 = arith.constant dense<0.000000e+00> : vector<8xf32>
    %254 = vector.multi_reduction <add>, %253, %cst_100 [1] : vector<8x32xf32> to vector<8xf32>
    %255 = vector.shape_cast %254 : vector<8xf32> to vector<8x1xf32>
    %cst_101 = arith.constant 3.200000e+01 : f32
    %256 = vector.broadcast %cst_101 : f32 to vector<8x1xf32>
    %257 = arith.divf %255, %256 : vector<8x1xf32>
    %258 = arith.mulf %252, %252 : vector<8x1xf32>
    %259 = arith.subf %257, %258 : vector<8x1xf32>
    %260 = vector.broadcast %252 : vector<8x1xf32> to vector<8x32xf32>
    %261 = arith.subf %246, %260 : vector<8x32xf32>
    %cst_102 = arith.constant 9.99999974E-6 : f32
    %262 = vector.broadcast %cst_102 : f32 to vector<8x1xf32>
    %263 = arith.addf %259, %262 : vector<8x1xf32>
    %264 = math.rsqrt %263 : vector<8x1xf32>
    %265 = vector.broadcast %264 : vector<8x1xf32> to vector<8x32xf32>
    %266 = arith.mulf %261, %265 : vector<8x32xf32>
    %267 = vector.broadcast %247 : vector<1x32xf32> to vector<8x32xf32>
    %268 = arith.mulf %266, %267 : vector<8x32xf32>
    %269 = vector.broadcast %248 : vector<1x32xf32> to vector<8x32xf32>
    %270 = arith.addf %268, %269 : vector<8x32xf32>
    %271 = arith.truncf %270 : vector<8x32xf32> to vector<8x32xbf16>
    %c1_103 = arith.constant 1 : index
    %c0_104 = arith.constant 0 : index
    %c0_105 = arith.constant 0 : index
    %272 = vector.load %arg9[%c1_103, %c0_104, %c0_105] : memref<2x32x64xbf16, #tpu.memory_space<vmem>>, vector<1x32x64xbf16>
    %273 = vector.shape_cast %272 : vector<1x32x64xbf16> to vector<32x64xbf16>
    %cst_106 = arith.constant dense<0.000000e+00> : vector<8x64xf32>
    %274 = tpu.matmul %271, %273, %cst_106 {dimension_numbers = #tpu.dot_dimension_numbers<[1], [0], [0], [1], [0, 0, 1, 1], [], []>} : vector<8x32xbf16>, vector<32x64xbf16>, vector<8x64xf32> -> vector<8x64xf32>
    %c1_107 = arith.constant 1 : index
    %c0_108 = arith.constant 0 : index
    %c0_109 = arith.constant 0 : index
    %275 = vector.load %arg10[%c1_107, %c0_108, %c0_109] : memref<2x1x64xf32, #tpu.memory_space<vmem>>, vector<1x1x64xf32>
    %276 = vector.shape_cast %275 : vector<1x1x64xf32> to vector<1x64xf32>
    %277 = vector.broadcast %276 : vector<1x64xf32> to vector<8x64xf32>
    %278 = arith.addf %274, %277 : vector<8x64xf32>
    %cst_110 = arith.constant 5.000000e-01 : f32
    %279 = vector.broadcast %cst_110 : f32 to vector<8x64xf32>
    %280 = arith.mulf %279, %278 : vector<8x64xf32>
    %cst_111 = arith.constant 4.471500e-02 : f32
    %281 = vector.broadcast %cst_111 : f32 to vector<8x64xf32>
    %282 = arith.mulf %281, %278 : vector<8x64xf32>
    %283 = arith.mulf %282, %278 : vector<8x64xf32>
    %284 = arith.mulf %283, %278 : vector<8x64xf32>
    %285 = arith.addf %278, %284 : vector<8x64xf32>
    %cst_112 = arith.constant 0.797884583 : f32
    %286 = vector.broadcast %cst_112 : f32 to vector<8x64xf32>
    %287 = arith.mulf %286, %285 : vector<8x64xf32>
    %288 = math.tanh %287 : vector<8x64xf32>
    %cst_113 = arith.constant 1.000000e+00 : f32
    %289 = vector.broadcast %cst_113 : f32 to vector<8x64xf32>
    %290 = arith.addf %289, %288 : vector<8x64xf32>
    %291 = arith.mulf %280, %290 : vector<8x64xf32>
    %292 = arith.truncf %291 : vector<8x64xf32> to vector<8x64xbf16>
    %c1_114 = arith.constant 1 : index
    %c0_115 = arith.constant 0 : index
    %c0_116 = arith.constant 0 : index
    %293 = vector.load %arg11[%c1_114, %c0_115, %c0_116] : memref<2x64x32xbf16, #tpu.memory_space<vmem>>, vector<1x64x32xbf16>
    %294 = vector.shape_cast %293 : vector<1x64x32xbf16> to vector<64x32xbf16>
    %cst_117 = arith.constant dense<0.000000e+00> : vector<8x32xf32>
    %295 = tpu.matmul %292, %294, %cst_117 {dimension_numbers = #tpu.dot_dimension_numbers<[1], [0], [0], [1], [0, 0, 1, 1], [], []>} : vector<8x64xbf16>, vector<64x32xbf16>, vector<8x32xf32> -> vector<8x32xf32>
    %c1_118 = arith.constant 1 : index
    %c0_119 = arith.constant 0 : index
    %c0_120 = arith.constant 0 : index
    %296 = vector.load %arg12[%c1_118, %c0_119, %c0_120] : memref<2x1x32xf32, #tpu.memory_space<vmem>>, vector<1x1x32xf32>
    %297 = vector.shape_cast %296 : vector<1x1x32xf32> to vector<1x32xf32>
    %298 = vector.broadcast %297 : vector<1x32xf32> to vector<8x32xf32>
    %299 = arith.addf %295, %298 : vector<8x32xf32>
    %c1_121 = arith.constant 1 : index
    %c0_122 = arith.constant 0 : index
    %c0_123 = arith.constant 0 : index
    %300 = vector.load %arg13[%c1_121, %c0_122, %c0_123] : memref<2x2x32xf32, #tpu.memory_space<vmem>>, vector<1x2x32xf32>
    %301 = vector.shape_cast %300 : vector<1x2x32xf32> to vector<2x32xf32>
    %302 = arith.addf %270, %299 : vector<8x32xf32>
    %303 = vector.extract_strided_slice %301 {offsets = [0, 0], sizes = [1, 32], strides = [1, 1]} : vector<2x32xf32> to vector<1x32xf32>
    %304 = vector.extract_strided_slice %301 {offsets = [1, 0], sizes = [1, 32], strides = [1, 1]} : vector<2x32xf32> to vector<1x32xf32>
    %cst_124 = arith.constant dense<0.000000e+00> : vector<8xf32>
    %305 = vector.multi_reduction <add>, %302, %cst_124 [1] : vector<8x32xf32> to vector<8xf32>
    %306 = vector.shape_cast %305 : vector<8xf32> to vector<8x1xf32>
    %cst_125 = arith.constant 3.200000e+01 : f32
    %307 = vector.broadcast %cst_125 : f32 to vector<8x1xf32>
    %308 = arith.divf %306, %307 : vector<8x1xf32>
    %309 = arith.mulf %302, %302 : vector<8x32xf32>
    %cst_126 = arith.constant dense<0.000000e+00> : vector<8xf32>
    %310 = vector.multi_reduction <add>, %309, %cst_126 [1] : vector<8x32xf32> to vector<8xf32>
    %311 = vector.shape_cast %310 : vector<8xf32> to vector<8x1xf32>
    %cst_127 = arith.constant 3.200000e+01 : f32
    %312 = vector.broadcast %cst_127 : f32 to vector<8x1xf32>
    %313 = arith.divf %311, %312 : vector<8x1xf32>
    %314 = arith.mulf %308, %308 : vector<8x1xf32>
    %315 = arith.subf %313, %314 : vector<8x1xf32>
    %316 = vector.broadcast %308 : vector<8x1xf32> to vector<8x32xf32>
    %317 = arith.subf %302, %316 : vector<8x32xf32>
    %cst_128 = arith.constant 9.99999974E-6 : f32
    %318 = vector.broadcast %cst_128 : f32 to vector<8x1xf32>
    %319 = arith.addf %315, %318 : vector<8x1xf32>
    %320 = math.rsqrt %319 : vector<8x1xf32>
    %321 = vector.broadcast %320 : vector<8x1xf32> to vector<8x32xf32>
    %322 = arith.mulf %317, %321 : vector<8x32xf32>
    %323 = vector.broadcast %303 : vector<1x32xf32> to vector<8x32xf32>
    %324 = arith.mulf %322, %323 : vector<8x32xf32>
    %325 = vector.broadcast %304 : vector<1x32xf32> to vector<8x32xf32>
    %326 = arith.addf %324, %325 : vector<8x32xf32>
    %327 = vector.extract_strided_slice %326 {offsets = [0, 0], sizes = [1, 32], strides = [1, 1]} : vector<8x32xf32> to vector<1x32xf32>
    %328 = arith.truncf %327 : vector<1x32xf32> to vector<1x32xbf16>
    %c0_129 = arith.constant 0 : index
    %c0_130 = arith.constant 0 : index
    %329 = vector.load %arg14[%c0_129, %c0_130] : memref<32x32xbf16, #tpu.memory_space<vmem>>, vector<32x32xbf16>
    %cst_131 = arith.constant dense<0.000000e+00> : vector<1x32xf32>
    %330 = tpu.matmul %328, %329, %cst_131 {dimension_numbers = #tpu.dot_dimension_numbers<[1], [0], [0], [1], [0, 0, 1, 1], [], []>} : vector<1x32xbf16>, vector<32x32xbf16>, vector<1x32xf32> -> vector<1x32xf32>
    %c0_132 = arith.constant 0 : index
    %c0_133 = arith.constant 0 : index
    %331 = vector.load %arg15[%c0_132, %c0_133] : memref<1x32xf32, #tpu.memory_space<vmem>>, vector<1x32xf32>
    %332 = arith.addf %330, %331 : vector<1x32xf32>
    %333 = math.tanh %332 : vector<1x32xf32>
    %334 = arith.truncf %333 : vector<1x32xf32> to vector<1x32xbf16>
    %c0_134 = arith.constant 0 : index
    %c0_135 = arith.constant 0 : index
    %335 = vector.load %arg16[%c0_134, %c0_135] : memref<32x128xbf16, #tpu.memory_space<vmem>>, vector<32x128xbf16>
    %cst_136 = arith.constant dense<0.000000e+00> : vector<1x128xf32>
    %336 = tpu.matmul %334, %335, %cst_136 {dimension_numbers = #tpu.dot_dimension_numbers<[1], [0], [0], [1], [0, 0, 1, 1], [], []>} : vector<1x32xbf16>, vector<32x128xbf16>, vector<1x128xf32> -> vector<1x128xf32>
    %c0_137 = arith.constant 0 : index
    %c0_138 = arith.constant 0 : index
    %337 = vector.load %arg17[%c0_137, %c0_138] : memref<1x128xf32, #tpu.memory_space<vmem>>, vector<1x128xf32>
    %338 = arith.addf %336, %337 : vector<1x128xf32>
    %c0_139 = arith.constant 0 : index
    %c0_140 = arith.constant 0 : index
    %c0_141 = arith.constant 0 : index
    %339 = vector.load %arg18[%c0_139, %c0_140, %c0_141] : memref<1x1x128xf32, #tpu.memory_space<vmem>>, vector<1x1x128xf32>
    %340 = vector.shape_cast %339 : vector<1x1x128xf32> to vector<1x128xf32>
    %341 = vector.shape_cast %338 : vector<1x128xf32> to vector<1x1x128xf32>
    tpu.vector_store %arg18[%c0_139, %c0_140, %c0_141], %341 {strides = array<i32>} : memref<1x1x128xf32, #tpu.memory_space<vmem>>, vector<1x1x128xf32>,
    return
  }
  func.func @transform_0(%arg0: i32) -> (i32, i32, i32) {
    %c0_i32 = arith.constant 0 : i32
    %c0_i32_0 = arith.constant 0 : i32
    %c0_i32_1 = arith.constant 0 : i32
    return %arg0, %c0_i32, %c0_i32_0 : i32, i32, i32
  }
  func.func @transform_1(%arg0: i32) -> (i32, i32, i32) {
    %c0_i32 = arith.constant 0 : i32
    %c0_i32_0 = arith.constant 0 : i32
    %c0_i32_1 = arith.constant 0 : i32
    return %arg0, %c0_i32, %c0_i32_0 : i32, i32, i32
  }
  func.func @transform_2(%arg0: i32) -> (i32, i32) {
    %c0_i32 = arith.constant 0 : i32
    %c0_i32_0 = arith.constant 0 : i32
    %c0_i32_1 = arith.constant 0 : i32
    return %c0_i32, %c0_i32_0 : i32, i32
  }
  func.func @transform_3(%arg0: i32) -> (i32, i32, i32) {
    %c0_i32 = arith.constant 0 : i32
    %c0_i32_0 = arith.constant 0 : i32
    %c0_i32_1 = arith.constant 0 : i32
    %c0_i32_2 = arith.constant 0 : i32
    return %c0_i32, %c0_i32_0, %c0_i32_1 : i32, i32, i32
  }
  func.func @transform_4(%arg0: i32) -> (i32, i32, i32) {
    %c0_i32 = arith.constant 0 : i32
    %c0_i32_0 = arith.constant 0 : i32
    %c0_i32_1 = arith.constant 0 : i32
    %c0_i32_2 = arith.constant 0 : i32
    return %c0_i32, %c0_i32_0, %c0_i32_1 : i32, i32, i32
  }
  func.func @transform_5(%arg0: i32) -> (i32, i32, i32) {
    %c0_i32 = arith.constant 0 : i32
    %c0_i32_0 = arith.constant 0 : i32
    %c0_i32_1 = arith.constant 0 : i32
    %c0_i32_2 = arith.constant 0 : i32
    return %c0_i32, %c0_i32_0, %c0_i32_1 : i32, i32, i32
  }
  func.func @transform_6(%arg0: i32) -> (i32, i32, i32) {
    %c0_i32 = arith.constant 0 : i32
    %c0_i32_0 = arith.constant 0 : i32
    %c0_i32_1 = arith.constant 0 : i32
    %c0_i32_2 = arith.constant 0 : i32
    return %c0_i32, %c0_i32_0, %c0_i32_1 : i32, i32, i32
  }
  func.func @transform_7(%arg0: i32) -> (i32, i32, i32) {
    %c0_i32 = arith.constant 0 : i32
    %c0_i32_0 = arith.constant 0 : i32
    %c0_i32_1 = arith.constant 0 : i32
    %c0_i32_2 = arith.constant 0 : i32
    return %c0_i32, %c0_i32_0, %c0_i32_1 : i32, i32, i32
  }
  func.func @transform_8(%arg0: i32) -> (i32, i32, i32) {
    %c0_i32 = arith.constant 0 : i32
    %c0_i32_0 = arith.constant 0 : i32
    %c0_i32_1 = arith.constant 0 : i32
    %c0_i32_2 = arith.constant 0 : i32
    return %c0_i32, %c0_i32_0, %c0_i32_1 : i32, i32, i32
  }
  func.func @transform_9(%arg0: i32) -> (i32, i32, i32) {
    %c0_i32 = arith.constant 0 : i32
    %c0_i32_0 = arith.constant 0 : i32
    %c0_i32_1 = arith.constant 0 : i32
    %c0_i32_2 = arith.constant 0 : i32
    return %c0_i32, %c0_i32_0, %c0_i32_1 : i32, i32, i32
  }
  func.func @transform_10(%arg0: i32) -> (i32, i32, i32) {
    %c0_i32 = arith.constant 0 : i32
    %c0_i32_0 = arith.constant 0 : i32
    %c0_i32_1 = arith.constant 0 : i32
    %c0_i32_2 = arith.constant 0 : i32
    return %c0_i32, %c0_i32_0, %c0_i32_1 : i32, i32, i32
  }
  func.func @transform_11(%arg0: i32) -> (i32, i32, i32) {
    %c0_i32 = arith.constant 0 : i32
    %c0_i32_0 = arith.constant 0 : i32
    %c0_i32_1 = arith.constant 0 : i32
    %c0_i32_2 = arith.constant 0 : i32
    return %c0_i32, %c0_i32_0, %c0_i32_1 : i32, i32, i32
  }
  func.func @transform_12(%arg0: i32) -> (i32, i32, i32) {
    %c0_i32 = arith.constant 0 : i32
    %c0_i32_0 = arith.constant 0 : i32
    %c0_i32_1 = arith.constant 0 : i32
    %c0_i32_2 = arith.constant 0 : i32
    return %c0_i32, %c0_i32_0, %c0_i32_1 : i32, i32, i32
  }
  func.func @transform_13(%arg0: i32) -> (i32, i32) {
    %c0_i32 = arith.constant 0 : i32
    %c0_i32_0 = arith.constant 0 : i32
    %c0_i32_1 = arith.constant 0 : i32
    return %c0_i32, %c0_i32_0 : i32, i32
  }
  func.func @transform_14(%arg0: i32) -> (i32, i32) {
    %c0_i32 = arith.constant 0 : i32
    %c0_i32_0 = arith.constant 0 : i32
    %c0_i32_1 = arith.constant 0 : i32
    return %c0_i32, %c0_i32_0 : i32, i32
  }
  func.func @transform_15(%arg0: i32) -> (i32, i32) {
    %c0_i32 = arith.constant 0 : i32
    %c0_i32_0 = arith.constant 0 : i32
    %c0_i32_1 = arith.constant 0 : i32
    return %c0_i32, %c0_i32_0 : i32, i32
  }
  func.func @transform_16(%arg0: i32) -> (i32, i32) {
    %c0_i32 = arith.constant 0 : i32
    %c0_i32_0 = arith.constant 0 : i32
    %c0_i32_1 = arith.constant 0 : i32
    return %c0_i32, %c0_i32_0 : i32, i32
  }
  func.func @transform_17(%arg0: i32) -> (i32, i32, i32) {
    %c0_i32 = arith.constant 0 : i32
    %c0_i32_0 = arith.constant 0 : i32
    %c0_i32_1 = arith.constant 0 : i32
    return %arg0, %c0_i32, %c0_i32_0 : i32, i32, i32
  }
}

</mosaic_0001>

<bundles_post_ra>
// kernel: tpu_custom_call.1
= control target key start
LH: loop header
LB: loop body
LE: loop exit
PB: predicated region body
PF: predicated region fallthrough
CT: control target
= control target key end

     0   :  { %s3840_s0 = inlined_call_operand.hbm [shape: bf16[2,8,32], index: 0, kind: input, shape index: {}]   ;;  %s3841_s1 = inlined_call_operand.hbm [shape: f32[2,1,8], index: 1, kind: input, shape index: {}]   ;;  %s3842_s2 = inlined_call_operand.hbm [shape: f32[2,32], index: 2, kind: input, shape index: {}]   ;;  %s3843_s3 = inlined_call_operand.vmem [shape: bf16[2,32,128], index: 3, kind: input, shape index: {}]   ;;  %s3844_s4 = inlined_call_operand.hbm [shape: f32[2,1,128], index: 4, kind: input, shape index: {}]   ;;  %s3845_s5 = inlined_call_operand.vmem [shape: bf16[2,32,32], index: 5, kind: input, shape index: {}]   ;;  %s3846_s6 = inlined_call_operand.hbm [shape: f32[2,1,32], index: 6, kind: input, shape index: {}]   ;;  %s3847_s7 = inlined_call_operand.hbm [shape: f32[2,2,32], index: 7, kind: input, shape index: {}]   ;;  %s3848_s8 = inlined_call_operand.vmem [shape: bf16[2,32,64], index: 8, kind: input, shape index: {}]   ;;  %s3849_s9 = inlined_call_operand.hbm [shape: f32[2,1,64], index: 9, kind: input, shape index: {}]   ;;  %s3850_s10 = inlined_call_operand.vmem [shape: bf16[2,64,32], index: 10, kind: input, shape index: {}]   ;;  %s3851_s11 = inlined_call_operand.hbm [shape: f32[2,1,32], index: 11, kind: input, shape index: {}]   ;;  %s3852_s12 = inlined_call_operand.hbm [shape: f32[2,2,32], index: 12, kind: input, shape index: {}]   ;;  %s3853_s13 = inlined_call_operand.vmem [shape: bf16[32,32], index: 13, kind: input, shape index: {}]   ;;  %s3854_s14 = inlined_call_operand.vmem [shape: f32[1,32], index: 14, kind: input, shape index: {}]   ;;  %s3855_s15 = inlined_call_operand.hbm [shape: bf16[32,128], index: 15, kind: input, shape index: {}]   ;;  %s3856_s16 = inlined_call_operand.vmem [shape: f32[1,128], index: 16, kind: input, shape index: {}]   ;;  %s3857_s17 = inlined_call_operand.hbm [shape: f32[2,1,128], index: 17, kind: output, shape index: {}]  }
   0x1   :  { %3876 = sst [smem:[#allocation28_spill]] %s3840_s0 }
   0x2   :  { %3877 = sst [smem:[#allocation29_spill]] %s3841_s1 }
   0x3   :  { %3878 = sst [smem:[#allocation30_spill]] %s3842_s2 }
   0x4   :  { %3879 = sst [smem:[#allocation31_spill]] %s3844_s4 }
   0x5   :  { %3880 = sst [smem:[#allocation32_spill]] %s3845_s5 }
   0x6   :  { %3881 = sst [smem:[#allocation33_spill]] %s3846_s6 }
   0x7   :  { %3882 = sst [smem:[#allocation34_spill]] %s3847_s7 }
   0x8   :  { %3883 = sst [smem:[#allocation35_spill]] %s3848_s8 }
   0x9   :  { %3884 = sst [smem:[#allocation36_spill]] %s3849_s9 }
   0xa   :  { %3885 = sst [smem:[#allocation37_spill]] %s3850_s10 }
   0xb   :  { %3886 = sst [smem:[#allocation38_spill]] %s3853_s13 }
   0xc   :  { %3887 = sst [smem:[#allocation39_spill]] %s3854_s14 }
   0xd   :  { %3888 = sst [smem:[#allocation40_spill]] %s3856_s16 }
   0xe   :  { %3889 = sst [smem:[#allocation41_spill]] %s3857_s17 }
   0xf   :  { %22 = vsyncpa [#allocation3], 0 }
  0x10   :  { %24 = vsyncpa [#allocation3 + $0x1], 0 }
  0x11   :  { %25 = vsyncpa [#allocation6], 0 }
  0x12   :  { %27 = vsyncpa [#allocation6 + $0x1], 0 }
  0x13   :  { %28 = vsyncpa [#allocation9], 0 }
  0x14   :  { %29 = vsyncpa [#allocation12], 0 }
  0x15   :  { %30 = vsyncpa [#allocation15], 0 }
  0x16   :  { %31 = vsyncpa [#allocation18], 0 }
  0x17   :  { %32 = vsyncpa [#allocation4], 0 }
  0x18   :  { %34 = vsyncpa [#allocation4 + $0x1], 0  ;;  %s3194_s24 = smov 0   ;;  %s3196_s25 = smov 0  }
  0x19   :  { %s3198_s26 = smov 0   ;;  %s3200_s27 = smov 0  }
  0x1a LB: > { %s3078_s28 = smov [#allocation7]   ;;  %s3215_s0 = sadd.s32 4294967295, %s3076_s27   ;;  %s3076_s27 = sphi %s3200_s27, %s3937_s27   ;;  %s3072_s26 = sphi %s3198_s26, %s3936_s26   ;;  %s3068_s25 = sphi %s3196_s25, %s3935_s25   ;;  %s3064_s24 = sphi %s3194_s24, %s3934_s24  }
  0x1b   : > { %s451_s29 = sshll.u32 %s3078_s28, 4  ;;  %p2217_p0 = scmp.ge.s32.totalorder %s3076_s27, 1  ;;  %s452_s29 = int_to_ptr.vmem [resolvable:$true] %s451_s29 }
  0x1c   : > { %p3861_p1 = scmp.eq.s32.totalorder %s3215_s0, 0  ;;  %p438_p2 = scmp.lt.s32.totalorder %s3076_s27, 3 }
  0x1d   : > { %s3079_s18 = smov [#allocation8]   ;;  %s3080_s20 = smov [#allocation11]  }
  0x1e   : > { %p3220_p3 = pnand %p2217_p0, %p438_p2  ;;  %s464_s19 = sshll.u32 %s3079_s18, 4  ;;  %s3227_s19 = int_to_ptr.vmem [resolvable:$true] %s464_s19 }
  0x1f   : > { %s493_s21 = sshll.u32 %s3080_s20, 4  ;;  %s3892_s2 = sld [smem:[#allocation30_spill]]  ;;  %s3235_s21 = int_to_ptr.vmem [resolvable:$true] %s493_s21 }
  0x20   : > { %s3890_s30 = scalar_select %p3220_p3, 1, 0 }
  0x21   : > { %p2537_p5 = pneg %p3220_p3 }
  0x23   : > { %p3231_p6 = pnand %p2537_p5, %p3861_p1 }
  0x25   : > { %s2702_s28 = scalar_lea.hbm %s3892_s2, 32  ;;  %p3245_p8 = pneg %p3231_p6 }
  0x26   : > { %p2703_p7 = scmp.ne.s32.totalorder %s3892_s2, %s2702_s28  ;;  %p2709_p11 = scmp.lt.u32.totalorder %s2702_s28, %s3892_s2 }
  0x28   : > { %p2705_p9 = pnand %p3245_p8, %p2703_p7 }
  0x2a   : > { %p2706_p10 = pneg %p2705_p9 }
  0x2c   : > { %p2711_p12 = pnand %p2709_p11, %p2706_p10 }
  0x2e   : > { %2714 = shalt.err (!%p2711_p12)
}
  0x2f   : > { %s2715_s22 = scalar_lea.vmem %s452_s29, 32  ;;  %p2723_p5 = scmp.lt.s32.totalorder %s452_s29, %s452_s29 }
  0x30   : > { %p2716_p13 = scmp.ne.s32.totalorder %s452_s29, %s2715_s22  ;;  %p2724_p4 = scmp.lt.s32.totalorder %s2715_s22, %s2715_s22 }
  0x32   : > { %p2718_p0 = pnand %p2716_p13, %p3245_p8  ;;  %p2725_p1 = por %p2724_p4, %p2723_p5 }
  0x34   : > { %p2719_p2 = pneg %p2718_p0 }
  0x36   : > { %p2726_p3 = pnand %p2725_p1, %p2719_p2 }
  0x38   : > { %2729 = shalt.err (!%p2726_p3)
}
  0x39   : > { %2540 = dma.hbm_to_vmem [thread:$0]  (!%p3231_p6), %s3892_s2, 32, %s452_s29, [#allocation6]  }
  0x3a   : > { %s3894_s4 = sld [smem:[#allocation31_spill]] }
  0x40   : > { %s2730_s28 = scalar_lea.hbm %s3894_s4, 32 }
  0x41   : > { %p2731_p7 = scmp.ne.s32.totalorder %s3894_s4, %s2730_s28  ;;  %p2737_p1 = scmp.lt.u32.totalorder %s2730_s28, %s3894_s4 }
  0x43   : > { %p2733_p9 = pnand %p2731_p7, %p3245_p8 }
  0x45   : > { %p2734_p4 = pneg %p2733_p9 }
  0x47   : > { %p2739_p3 = pnand %p2737_p1, %p2734_p4 }
  0x49   : > { %2742 = shalt.err (!%p2739_p3)
}
  0x4a   : > { %s2743_s29 = scalar_lea.vmem %s3227_s19, 32  ;;  %p2751_p13 = scmp.lt.s32.totalorder %s3227_s19, %s3227_s19 }
  0x4b   : > { %p2744_p10 = scmp.ne.s32.totalorder %s3227_s19, %s2743_s29  ;;  %p2752_p0 = scmp.lt.s32.totalorder %s2743_s29, %s2743_s29 }
  0x4d   : > { %p2746_p11 = pnand %p2744_p10, %p3245_p8  ;;  %p2753_p2 = por %p2752_p0, %p2751_p13 }
  0x4f   : > { %p2747_p12 = pneg %p2746_p11 }
  0x51   : > { %p2754_p5 = pnand %p2753_p2, %p2747_p12 }
  0x53   : > { %2757 = shalt.err (!%p2754_p5)
}
  0x54   : > { %s3865_s13 = smov 16   ;;  %s3867_s10 = smov 1  }
  0x55   : > { %2543 = dma.hbm_to_vmem [thread:$0]  (!%p3231_p6), %s3894_s4, 32, %s3227_s19, [#allocation9], %s3865_s13, %s3865_s13, %s3867_s10  }
  0x56   : > { %s3895_s7 = sld [smem:[#allocation34_spill]] }
  0x5c   : > { %s2758_s28 = scalar_lea.hbm %s3895_s7, 64 }
  0x5d   : > { %p2759_p7 = scmp.ne.s32.totalorder %s3895_s7, %s2758_s28  ;;  %p2765_p1 = scmp.lt.u32.totalorder %s2758_s28, %s3895_s7 }
  0x5f   : > { %p2761_p9 = pnand %p2759_p7, %p3245_p8 }
  0x61   : > { %p2762_p4 = pneg %p2761_p9 }
  0x63   : > { %p2767_p3 = pnand %p2765_p1, %p2762_p4 }
  0x65   : > { %2770 = shalt.err (!%p2767_p3)
}
  0x66   : > { %s2771_s19 = scalar_lea.vmem %s3235_s21, 64  ;;  %p2779_p13 = scmp.lt.s32.totalorder %s3235_s21, %s3235_s21 }
  0x67   : > { %p2772_p10 = scmp.ne.s32.totalorder %s3235_s21, %s2771_s19  ;;  %p2780_p0 = scmp.lt.s32.totalorder %s2771_s19, %s2771_s19 }
  0x69   : > { %p2774_p11 = pnand %p2772_p10, %p3245_p8  ;;  %p2781_p2 = por %p2780_p0, %p2779_p13 }
  0x6b   : > { %p2775_p12 = pneg %p2774_p11 }
  0x6d   : > { %p2782_p5 = pnand %p2781_p2, %p2775_p12 }
  0x6f   : > { %2785 = shalt.err (!%p2782_p5)
}
  0x70   : > { %s3871_s16 = smov 32   ;;  %s3084_s2 = smov 2  }
  0x71   : > { %2549 = dma.hbm_to_vmem [thread:$0]  (!%p3231_p6), %s3895_s7, 64, %s3235_s21, [#allocation12], %s3871_s16, %s3871_s16, %s3084_s2  }
  0x72   : > { %s3085_s23 = smov [#allocation14]   ;;  %s3086_s20 = smov [#allocation10]  }
  0x73   : > { %s525_s28 = sshll.u32 %s3085_s23, 4  ;;  %s480_s22 = sshll.u32 %s3086_s20, 4  ;;  %s526_s28 = int_to_ptr.vmem [resolvable:$true] %s525_s28  ;;  %s481_s22 = int_to_ptr.vmem [resolvable:$true] %s480_s22 }
  0x74   : > { %s2786_s13 = scalar_lea.hbm %s3851_s11, 32 }
  0x75   : > { %p2787_p7 = scmp.ne.s32.totalorder %s3851_s11, %s2786_s13  ;;  %p2793_p1 = scmp.lt.u32.totalorder %s2786_s13, %s3851_s11 }
  0x77   : > { %p2789_p9 = pnand %p2787_p7, %p3245_p8 }
  0x79   : > { %p2790_p4 = pneg %p2789_p9 }
  0x7b   : > { %p2795_p3 = pnand %p2793_p1, %p2790_p4 }
  0x7d   : > { %2798 = shalt.err (!%p2795_p3)
}
  0x7e   : > { %s2799_s21 = scalar_lea.vmem %s526_s28, 32  ;;  %p2807_p13 = scmp.lt.s32.totalorder %s526_s28, %s526_s28 }
  0x7f   : > { %p2800_p10 = scmp.ne.s32.totalorder %s526_s28, %s2799_s21  ;;  %p2808_p0 = scmp.lt.s32.totalorder %s2799_s21, %s2799_s21 }
  0x81   : > { %p2802_p11 = pnand %p2800_p10, %p3245_p8  ;;  %p2809_p2 = por %p2808_p0, %p2807_p13 }
  0x83   : > { %p2803_p12 = pneg %p2802_p11 }
  0x85   : > { %p2810_p5 = pnand %p2809_p2, %p2803_p12 }
  0x87   : > { %2813 = shalt.err (!%p2810_p5)
}
  0x88   : > { %s3896_s4 = smov 1   ;;  %s3897_s10 = smov 16  }
  0x89   : > { %2555 = dma.hbm_to_vmem [thread:$0]  (!%p3231_p6), %s3851_s11, 32, %s526_s28, [#allocation15], %s3897_s10, %s3897_s10, %s3896_s4  }
  0x8a   : > { %s3898_s6 = sld [smem:[#allocation33_spill]] }
  0x90   : > { %s2814_s14 = scalar_lea.hbm %s3898_s6, 32 }
  0x91   : > { %p2815_p7 = scmp.ne.s32.totalorder %s3898_s6, %s2814_s14  ;;  %p2821_p1 = scmp.lt.u32.totalorder %s2814_s14, %s3898_s6 }
  0x93   : > { %p2817_p9 = pnand %p2815_p7, %p3245_p8 }
  0x95   : > { %p2818_p4 = pneg %p2817_p9 }
  0x97   : > { %p2823_p3 = pnand %p2821_p1, %p2818_p4 }
  0x99   : > { %2826 = shalt.err (!%p2823_p3)
}
  0x9a   : > { %s2827_s21 = scalar_lea.vmem %s481_s22, 32  ;;  %p2835_p13 = scmp.lt.s32.totalorder %s481_s22, %s481_s22 }
  0x9b   : > { %p2828_p10 = scmp.ne.s32.totalorder %s481_s22, %s2827_s21  ;;  %p2836_p0 = scmp.lt.s32.totalorder %s2827_s21, %s2827_s21 }
  0x9d   : > { %p2830_p11 = pnand %p2828_p10, %p3245_p8  ;;  %p2837_p2 = por %p2836_p0, %p2835_p13 }
  0x9f   : > { %p2831_p12 = pneg %p2830_p11 }
  0xa1   : > { %p2838_p5 = pnand %p2837_p2, %p2831_p12 }
  0xa3   : > { %2841 = shalt.err (!%p2838_p5)
}
  0xa4   : > { %2546 = dma.hbm_to_vmem [thread:$0]  (!%p3231_p6), %s3898_s6, 32, %s481_s22, [#allocation9], %s3897_s10, %s3897_s10, %s3896_s4  }
  0xa5   : > { %s3087_s8 = smov [#allocation13]   ;;  %s3088_s17 = smov [#allocation16]  }
  0xa6   : > { %s509_s13 = sshll.u32 %s3087_s8, 4  ;;  %s538_s14 = sshll.u32 %s3088_s17, 4  ;;  %s510_s13 = int_to_ptr.vmem [resolvable:$true] %s509_s13  ;;  %s539_s14 = int_to_ptr.vmem [resolvable:$true] %s538_s14 }
  0xa7   : > { %s3899_s9 = sld [smem:[#allocation36_spill]] }
  0xad   : > { %s2842_s29 = scalar_lea.hbm %s3899_s9, 32 }
  0xae   : > { %p2843_p7 = scmp.ne.s32.totalorder %s3899_s9, %s2842_s29  ;;  %p2849_p1 = scmp.lt.u32.totalorder %s2842_s29, %s3899_s9 }
  0xb0   : > { %p2845_p9 = pnand %p2843_p7, %p3245_p8 }
  0xb2   : > { %p2846_p4 = pneg %p2845_p9 }
  0xb4   : > { %p2851_p3 = pnand %p2849_p1, %p2846_p4 }
  0xb6   : > { %2854 = shalt.err (!%p2851_p3)
}
  0xb7   : > { %s2855_s22 = scalar_lea.vmem %s510_s13, 32  ;;  %p2863_p13 = scmp.lt.s32.totalorder %s510_s13, %s510_s13 }
  0xb8   : > { %p2856_p10 = scmp.ne.s32.totalorder %s510_s13, %s2855_s22  ;;  %p2864_p0 = scmp.lt.s32.totalorder %s2855_s22, %s2855_s22 }
  0xba   : > { %p2858_p11 = pnand %p2856_p10, %p3245_p8  ;;  %p2865_p2 = por %p2864_p0, %p2863_p13 }
  0xbc   : > { %p2859_p12 = pneg %p2858_p11 }
  0xbe   : > { %p2866_p5 = pnand %p2865_p2, %p2859_p12 }
  0xc0   : > { %2869 = shalt.err (!%p2866_p5)
}
  0xc1   : > { %2552 = dma.hbm_to_vmem [thread:$0]  (!%p3231_p6), %s3899_s9, 32, %s510_s13, [#allocation12], %s3897_s10, %s3897_s10, %s3896_s4  }
  0xc2   : > { %s2870_s23 = scalar_lea.hbm %s3852_s12, 64 }
  0xc3   : > { %p2871_p7 = scmp.ne.s32.totalorder %s3852_s12, %s2870_s23  ;;  %p2877_p1 = scmp.lt.u32.totalorder %s2870_s23, %s3852_s12 }
  0xc5   : > { %p2873_p9 = pnand %p2871_p7, %p3245_p8 }
  0xc7   : > { %p2874_p4 = pneg %p2873_p9 }
  0xc9   : > { %p2879_p3 = pnand %p2877_p1, %p2874_p4 }
  0xcb   : > { %2882 = shalt.err (!%p2879_p3)
}
  0xcc   : > { %s2883_s28 = scalar_lea.vmem %s539_s14, 64  ;;  %p2891_p13 = scmp.lt.s32.totalorder %s539_s14, %s539_s14 }
  0xcd   : > { %p2884_p10 = scmp.ne.s32.totalorder %s539_s14, %s2883_s28  ;;  %p2892_p0 = scmp.lt.s32.totalorder %s2883_s28, %s2883_s28 }
  0xcf   : > { %p2886_p11 = pnand %p2884_p10, %p3245_p8  ;;  %p2893_p2 = por %p2892_p0, %p2891_p13 }
  0xd1   : > { %p2887_p12 = pneg %p2886_p11 }
  0xd3   : > { %p2894_p5 = pnand %p2893_p2, %p2887_p12 }
  0xd5   : > { %2897 = shalt.err (!%p2894_p5)
}
  0xd6   : > { %s3900_s4 = smov 32   ;;  %s3089_s22 = smov [#allocation17]  }
  0xd7   : > { %2558 = dma.hbm_to_vmem [thread:$0]  (!%p3231_p6), %s3852_s12, 64, %s539_s14, [#allocation15], %s3900_s4, %s3900_s4, %s3084_s2  }
  0xd8   : > { %s557_s16 = sshll.u32 %s3089_s22, 4  ;;  %s2898_s17 = scalar_lea.hbm %s3855_s15, 256  ;;  %s558_s16 = int_to_ptr.vmem [resolvable:$true] %s557_s16 }
  0xd9   : > { %p2899_p7 = scmp.ne.s32.totalorder %s3855_s15, %s2898_s17  ;;  %p2905_p1 = scmp.lt.u32.totalorder %s2898_s17, %s3855_s15 }
  0xdb   : > { %p2901_p9 = pnand %p2899_p7, %p3245_p8 }
  0xdd   : > { %p2902_p4 = pneg %p2901_p9 }
  0xdf   : > { %p2907_p3 = pnand %p2905_p1, %p2902_p4 }
  0xe1   : > { %2910 = shalt.err (!%p2907_p3)
}
  0xe2   : > { %s2911_s2 = scalar_lea.vmem %s558_s16, 256  ;;  %p2919_p13 = scmp.lt.s32.totalorder %s558_s16, %s558_s16 }
  0xe3   : > { %p2912_p10 = scmp.ne.s32.totalorder %s558_s16, %s2911_s2  ;;  %p2920_p0 = scmp.lt.s32.totalorder %s2911_s2, %s2911_s2 }
  0xe5   : > { %p2914_p11 = pnand %p2912_p10, %p3245_p8  ;;  %p2921_p2 = por %p2920_p0, %p2919_p13 }
  0xe7   : > { %p2915_p12 = pneg %p2914_p11 }
  0xe9   : > { %p2922_p5 = pnand %p2921_p2, %p2915_p12 }
  0xeb   : > { %2925 = shalt.err (!%p2922_p5)
}
  0xec   : > { %s3090_s14 = smov 64   ;;  %s3091_s18 = smov 4  }
  0xed   : > { %2561 = dma.hbm_to_vmem [thread:$0]  (!%p3231_p6), %s3855_s15, 256, %s558_s16, [#allocation18], %s3090_s14, %s3090_s14, %s3091_s18  }
  0xee   : > { %s2216_s4 = sadd.s32 4294967294, %s3076_s27   ;;  %s3417_s10 = sadd.s32 1, %s3076_s27  }
  0xef   : > { %s44_s13 = ssub.s32 %s3076_s27, %s3417_s10  ;;  %s47_s22 = sadd.s32 1, %s3072_s26 }
  0xf0   : > { %p45_p8 = scmp.eq.s32.totalorder %s44_s13, 0  ;;  %p54_p7 = scmp.ne.s32.totalorder %s3072_s26, %s3068_s25 }
  0xf1   : > { %p55_p9 = scmp.eq.s32.totalorder %s3076_s27, 0  ;;  %p60_p4 = scmp.ne.s32.totalorder %s3068_s25, %s3064_s24 }
  0xf2   : > { %s3428_s5 = scalar_select %p45_p8, %s3072_s26, %s47_s22  }
  0xf3   : > { %p3430_p1 = por %p55_p9, %p54_p7  ;;  %p3902_p3 = scmp.eq.s32.totalorder %s3215_s0, 0 }
  0xf4   : > { %p425_p10 = scmp.eq.s32.totalorder %s3215_s0, 1  ;;  %p431_p11 = scmp.eq.s32.totalorder %s2216_s4, 1 }
  0xf5   : > { %p3436_p6 = por %p3902_p3, %p60_p4  ;;  %p2581_p12 = scmp.lt.s32.totalorder %s3076_s27, 2 }
  0xf6   : > { %s3443_s8 = sand.u32 1, %s3072_s26   ;;  %p3445_p13 = por %p425_p10, %p54_p7 }
  0xf7   : > { %s3903_s16 = scalar_select %p3436_p6, 1, 0 }
  0xf8   : > { %s3904_s17 = scalar_select %p3445_p13, 1, 0 }
  0xf9   : > { %p3449_p0 = por %p431_p11, %p60_p4  ;;  %s2227_s20 = sshll.u32 %s3443_s8, 2 }
  0xfa   : > { %s2228_s29 = sshll.u32 %s3076_s27, 6  ;;  %s3906_s14 = sld [smem:[#allocation28_spill]] }
  0xfb   : > { %s3905_s23 = scalar_select %p3449_p0, 1, 0 }
  0xfc   : > { %s578_s21 = scalar_lea.vmem [#allocation2], %s2227_s20  ;;  %p3464_p2 = pnand %p2581_p12, %p3430_p1 }
  0xfd   : > { %s585_s28 = sshll.u32 %s578_s21, 4  ;;  %s575_s22 = scalar_lea.sflag [#allocation3], %s3443_s8  ;;  %s3460_s28 = int_to_ptr.vmem [resolvable:$true] %s585_s28 }
  0xfe   : > { %p2928_p8 = pneg %p3464_p2 }
 0x100   : > { %s3458_s18 = scalar_lea.hbm %s3906_s14, %s2228_s29  ;;  %s2931_s1 = scalar_lea.hbm %s3906_s14, 128 }
 0x101   : > { %s2926_s19 = scalar_lea.hbm %s3458_s18, 64  ;;  %p2932_p4 = scmp.lt.u32.totalorder %s3458_s18, %s3906_s14 }
 0x102   : > { %p2927_p5 = scmp.ne.s32.totalorder %s3458_s18, %s2926_s19  ;;  %p2933_p1 = scmp.lt.u32.totalorder %s2931_s1, %s2926_s19 }
 0x103   : > { %p2935_p10 = scmp.lt.u32.totalorder %s2926_s19, %s3458_s18 }
 0x104   : > { %p2929_p7 = pnand %p2928_p8, %p2927_p5  ;;  %p2934_p3 = por %p2933_p1, %p2932_p4 }
 0x106   : > { %p2930_p9 = pneg %p2929_p7  ;;  %p2936_p11 = por %p2935_p10, %p2934_p3 }
 0x108   : > { %p2937_p12 = pnand %p2936_p11, %p2930_p9 }
 0x10a   : > { %2940 = shalt.err (!%p2937_p12)
}
 0x10b   : > { %s2941_s13 = scalar_lea.vmem %s3460_s28, 64  ;;  %s3092_s20 = smov [#allocation2]  }
 0x10c   : > { %p2942_p5 = scmp.ne.s32.totalorder %s3460_s28, %s2941_s13  ;;  %s2946_s29 = sshll.u32 %s3092_s20, 4  ;;  %s2947_s29 = int_to_ptr.vmem [resolvable:$false] %s2946_s29 }
 0x10d   : > { %s2948_s2 = scalar_lea.vmem %s2947_s29, 128  ;;  %p2949_p13 = scmp.lt.s32.totalorder %s3460_s28, %s2947_s29 }
 0x10e   : > { %p2944_p7 = pnand %p2942_p5, %p2928_p8  ;;  %p2950_p4 = scmp.lt.s32.totalorder %s2948_s2, %s2941_s13 }
 0x110   : > { %p2945_p0 = pneg %p2944_p7  ;;  %p2951_p1 = por %p2950_p4, %p2949_p13 }
 0x112   : > { %p2952_p3 = pnand %p2951_p1, %p2945_p0 }
 0x114   : > { %2955 = shalt.err (!%p2952_p3)
}
 0x115   : > { %2565 = dma.hbm_to_vmem [thread:$0]  (!%p3464_p2), %s3458_s18, 64, %s3460_s28, %s575_s22  }
 0x116   : > { %s2229_s19 = sshll.u32 %s3076_s27, 4  ;;  %s595_s1 = scalar_lea.vmem [#allocation5], %s3443_s8 }
 0x117   : > { %s602_s21 = sshll.u32 %s595_s1, 4  ;;  %s3908_s7 = sld [smem:[#allocation29_spill]]  ;;  %s603_s21 = int_to_ptr.vmem [resolvable:$true] %s602_s21 }
 0x118   : > { %s3909_s13 = sand.u32 1, %s3076_s27  }
 0x119   : > { %s593_s2 = scalar_lea.sflag [#allocation6], %s3909_s13 }
 0x11d   : > { %s3500_s29 = scalar_lea.hbm %s3908_s7, %s2229_s19  ;;  %s2961_s28 = scalar_lea.hbm %s3908_s7, 32 }
 0x11e   : > { %s2956_s9 = scalar_lea.hbm %s3500_s29, 16  ;;  %p2962_p10 = scmp.lt.u32.totalorder %s3500_s29, %s3908_s7 }
 0x11f   : > { %p2957_p13 = scmp.ne.s32.totalorder %s3500_s29, %s2956_s9  ;;  %p2963_p11 = scmp.lt.u32.totalorder %s2961_s28, %s2956_s9 }
 0x120   : > { %p2965_p5 = scmp.lt.u32.totalorder %s2956_s9, %s3500_s29 }
 0x121   : > { %p2959_p0 = pnand %p2957_p13, %p2928_p8  ;;  %p2964_p12 = por %p2963_p11, %p2962_p10 }
 0x123   : > { %p2960_p9 = pneg %p2959_p0  ;;  %p2966_p7 = por %p2965_p5, %p2964_p12 }
 0x125   : > { %p2967_p4 = pnand %p2966_p7, %p2960_p9 }
 0x127   : > { %2970 = shalt.err (!%p2967_p4)
}
 0x128   : > { %s2971_s19 = scalar_lea.vmem %s603_s21, 16  ;;  %s3093_s1 = smov [#allocation5]  }
 0x129   : > { %p2972_p1 = scmp.ne.s32.totalorder %s603_s21, %s2971_s19  ;;  %s2976_s20 = sshll.u32 %s3093_s1, 4  ;;  %s2977_s20 = int_to_ptr.vmem [resolvable:$false] %s2976_s20 }
 0x12a   : > { %s2978_s13 = scalar_lea.vmem %s2977_s20, 32  ;;  %p2979_p0 = scmp.lt.s32.totalorder %s603_s21, %s2977_s20 }
 0x12b   : > { %p2974_p3 = pnand %p2972_p1, %p2928_p8  ;;  %p2980_p6 = scmp.lt.s32.totalorder %s2978_s13, %s2971_s19 }
 0x12d   : > { %p2975_p13 = pneg %p2974_p3  ;;  %p2981_p10 = por %p2980_p6, %p2979_p0 }
 0x12f   : > { %p2982_p11 = pnand %p2981_p10, %p2975_p13 }
 0x131   : > { %2985 = shalt.err (!%p2982_p11)
}
 0x132   : > { %2568 = dma.hbm_to_vmem [thread:$0]  (!%p3464_p2), %s3500_s29, 16, %s603_s21, %s593_s2  }
 0x133   : > { %p3910_p9 = scmp.ne.s32.totalorder %s3890_s30, 0 }
 0x134   : > { %s3526_s9 = sand.u32 (!%p3910_p9), 1, %s3068_s25   ;;  %p3911_p8 = scmp.ne.s32.totalorder (!%p3910_p9), %s3903_s16, 0 }
 0x135   : > { %611 = sbr.rel (%p3910_p9) target bundleno = 5413 (0x1525), region = 88  ;;  %s2231_s8 = sshll.u32 (!%p3910_p9), %s3526_s9, 2 }
 0x136   : > { %s614_s18 = scalar_lea.sflag (!%p3910_p9), [#allocation3], %s3526_s9  ;;  %s617_s28 = scalar_lea.vmem (!%p3910_p9), [#allocation2], %s2231_s8 }
 0x13c   : > { %3031 = dma.done.wait (%p3911_p8), %s614_s18, 64  }
 0x13d   : > { %3033 = vsyncadd (%p3911_p8), %s614_s18, 4294967232  ;;  %s622_s4 = sand.u32 1, %s3215_s0   ;;  %s625_s21 = scalar_lea.vmem [#allocation5], %s3526_s9 }
 0x13e   : > { %s623_s30 = scalar_lea.sflag [#allocation6], %s622_s4 }
 0x13f   : > { %3035 = dma.done.wait (%p3911_p8), %s623_s30, 16  }
 0x140   : > { %3037 = vsyncadd (%p3911_p8), %s623_s30, 4294967280  ;;  %p3912_p6 = scmp.eq.s32.totalorder %s3215_s0, 0 }
 0x142   : > { %3039 = dma.done.wait (%p3912_p6), [#allocation6], 32   ;;  %p3913_p2 = pmov %p3912_p6 }
 0x144   : > { %3041 = vsyncadd (%p3913_p2), [#allocation6], 4294967264  ;;  %p3914_p12 = pmov %p3913_p2 }
 0x145   : > { %p3915_p5 = pmov %p3913_p2 }
 0x146   : > { %3043 = dma.done.wait (%p3914_p12), [#allocation9], 64  }
 0x147   : > { %3045 = vsyncadd (%p3915_p5), [#allocation9], 4294967232  ;;  %p3916_p7 = pmov %p3913_p2 }
 0x148   : > { %p3917_p4 = pmov %p3913_p2 }
 0x149   : > { %3047 = dma.done.wait (%p3916_p7), [#allocation12], 96  }
 0x14a   : > { %3049 = vsyncadd (%p3917_p4), [#allocation12], 4294967200  ;;  %p3918_p1 = pmov %p3913_p2 }
 0x14c   : > { %3051 = dma.done.wait (%p3918_p1), [#allocation15], 96   ;;  %p3919_p3 = pmov %p3918_p1 }
 0x14d   : > { %p3920_p13 = pmov %p3918_p1 }
 0x14e   : > { %3053 = vsyncadd (%p3919_p3), [#allocation15], 4294967200 }
 0x14f   : > { %3055 = dma.done.wait (%p3920_p13), [#allocation18], 256   ;;  %p3921_p0 = pmov %p3918_p1 }
 0x150   : > { %vm718_vm0 = vcmask 261120   ;;  %v716_v0 = vld [vmem:[%s617_s28] sm:$0xf]  ;;  %v3094_v6 = vmov 0.0   ;;  %vm3095_vm1 = vmmov 0   ;;  %v2647_v7 = vld [vmem:[%s3843_s3 + $0x8] sm:$0xff]   ;;  %v735_v14 = vlaneseq }
 0x151   : > { %3057 = vsyncadd (%p3921_p0), [#allocation18], 4294967040  ;;  %v717_v1 = vunpack.c.l.bf16 %v716_v0  ;;  %v2646_v5 = vld [vmem:[%s3843_s3] sm:$0xff]   ;;  %2363 = vmatprep.subr.bf16.mxu0 %v3094_v6  ;;  %2367 = vmatprep.mubr.msk.bf16.mxu0 %vm3095_vm1, %v3094_v6  ;;  %v715_v18 = vld [vmem:[#allocation7] sm:$0x3]  ;;  %s3096_s22 = smov 112  }
 0x152   : > { %2364 = vmatpush3.bf16.msra.mxu0 %v2646_v5  ;;  %2371 = vmatprep.subr.bf16.mxu1 %v3094_v6  ;;  %v736_v16 = vshrl.u32 %v735_v14, 7  ;;  %v2240_v28 = vld [vmem:[#allocation8] ss:$0 sm:$0xff]  ;;  %s3097_s19 = smov 96   ;;  %s3098_s1 = smov 80   ;;  %vm816_vm2 = vcmask 130048  }
 0x153   : > { %v719_v2 = vsel %vm718_vm0, %v717_v1, 0.0  ;;  %v724_v3 = vmul.f32 %v717_v1, %v717_v1  ;;  %2365 = vmatprep.subr.bf16.mxu0 %v3094_v6  ;;  %2373 = vmatprep.mubr.msk.bf16.mxu1 %vm3095_vm1, %v3094_v6  ;;  %v712_v40 = vld [vmem:[%s625_s21] sm:$0x1]  ;;  %v3099_v41 = vmov -1e+09   ;;  %vm871_vm4 = vcmask 64512  }
 0x154   : > { %720 = vadd.xlane.f32.xlu0 %v719_v2  ;;  %v3576_v17 = vsub.s32 0, %v736_v16  ;;  %v3578_v19 = vsub.s32 1, %v736_v16  ;;  %vm713_vm3 = vcmp.gt.f32.partialorder %v712_v40, 0.5  ;;  %s3875_s20 = smov 48   ;;  %s3101_s13 = smov 64   ;;  %vm889_vm5 = vcmask 1043456  }
 0x155   : > { %v725_v4 = vsel %vm718_vm0, %v724_v3, 0.0  ;;  %v714_v42 = vsel %vm713_vm3, 0.0, %v3099_v41  ;;  %s3922_s28 = sld [smem:[#allocation32_spill]]  ;;  %s3874_s21 = smov 16   ;;  %vm1260_vm6 = vcmask 523264  }
 0x156   : > { %2366 = vmatpush3.bf16.msra.mxu0 %v2647_v7  ;;  %v738_v21 = vrot.slane %v715_v18, %v3576_v17  ;;  %v743_v24 = vrot.slane %v715_v18, %v3578_v19  ;;  %v3605_v43 = vrot.slane %v714_v42, %v3576_v17  ;;  %s3923_s2 = sld [smem:[#allocation35_spill]]  ;;  %s3924_s30 = sld [smem:[#allocation37_spill]] }
 0x157   : > { %2377 = vmatprep.subr.bf16.mxu0 %v3094_v6  ;;  %s3926_s29 = smov 16   ;;  %s3929_s16 = sld [smem:[#allocation40_spill]] }
 0x158   : > { %726 = vadd.xlane.f32.xlu0 %v725_v4  ;;  %s710_s6 = scalar_lea.vmem [#allocation19], %s3526_s9  ;;  %s3930_s4 = sld [smem:[#allocation41_spill]] }
 0x159   : > { %s2054_s8 = sshll.u32 %s710_s6, 4  ;;  %p3931_p11 = scmp.ne.s32.totalorder %s3904_s17, 0  ;;  %s3798_s8 = int_to_ptr.vmem [resolvable:$true] %s2054_s8 }
 0x15b   : > { %v2648_v18 = vld [vmem:[%s3922_s28] sm:$0xff]  }
 0x1e1   : > { %v721_v8 = vpop.xlane.xlu0 %720 }
 0x1e2   : > { %v723_v9 = vmul.f32 0.03125, %v721_v8 }
 0x1e4   : > { %v729_v11 = vmul.f32 %v723_v9, %v723_v9  ;;  %v731_v20 = vsub.f32 %v717_v1, %v723_v9 }
 0x1e5   : > { %v727_v10 = vpop.xlane.xlu0 %726 }
 0x1e6   : > { %v728_v12 = vmul.f32 0.03125, %v727_v10 }
 0x1e8   : > { %v730_v13 = vsub.f32 %v728_v12, %v729_v11 }
 0x1ea   : > { %v732_v15 = vadd.f32 1e-05, %v730_v13 }
 0x1ec   : > { %2670 = vrsqrt.f32 %v732_v15 }
 0x1f6   : > { %v2671_v22 = vpop.eup %2670 }
 0x1f7   : > { %v734_v23 = vmul.f32 %v2671_v22, %v731_v20  ;;  %v2649_v20 = vld [vmem:[%s3922_s28 + $0x8] sm:$0xff]  }
 0x1f9   : > { %v739_v25 = vmul.f32 %v738_v21, %v734_v23 }
 0x1fb   : > { %v3582_v26 = vadd.f32 %v743_v24, %v739_v25 }
 0x1fd   : > { %v745_v27 = vpack.c.bf16 %v3582_v26, %v3582_v26 }
 0x1ff   : > { %2368 = vmatmul.mubr.msk.bf16.vlgmr.msra.gmra.mrb[0].mxu0 %vm718_vm0, %v745_v27 }
 0x200   : > { %2379 = vmatprep.mubr.msk.bf16.mxu0 %vm3095_vm1, %v3094_v6 }
 0x2d2   : > { %v806_v29 = vpop.f32.mrb[0].mxu0 }
 0x2d3   : > { %v807_v30 = vadd.f32 %v2240_v28, %v806_v29  ;;  %v2369_v31 = vpop.f32.mrb[1].mxu0 }
 0x2d4   : > { %v809_v32 = vpop.f32.mrb[2].mxu0 }
 0x2d5   : > { %v812_v33 = vpack.c.bf16 %v807_v30, %v807_v30  ;;  %v2370_v34 = vpop.f32.mrb[3].mxu0 }
 0x2d7   : > { %933 = vrot.lane.b32.xlu0 %v812_v33, %s3096_s22  ;;  %814 = vrot.lane.b32.xlu1 %v812_v33, %s3097_s19 }
 0x2db   : > { %935 = vrot.lane.b32.xlu1 %v812_v33, %s3098_s1 }
 0x349   : > { %v815_v35 = vpop.permute.xlu1 %814  ;;  %v934_v39 = vpop.permute.xlu0 %933 }
 0x34a   : > { %v821_v36 = vsel %vm816_vm2, %v815_v35, 0 }
 0x34b   : > { %2372 = vmatpush3.bf16.xpose.msra.mxu1 %v821_v36 }
 0x34c   : > { %2383 = vmatprep.subr.bf16.mxu1 %v3094_v6 }
 0x34d   : > { %v936_v37 = vpop.permute.xlu1 %935 }
 0x34e   : > { %v941_v38 = vsel %vm816_vm2, %v936_v37, 0 }
 0x352   : > { %2374 = vmatmul.mubr.msk.bf16.vlgmr.msra.gmra.mrb[0].mxu1 %vm816_vm2, %v812_v33 }
 0x353   : > { %2384 = vmatpush3.bf16.xpose.msra.mxu1 %v941_v38  ;;  %2385 = vmatprep.mubr.msk.bf16.mxu1 %vm3095_vm1, %v3094_v6 }
 0x354   : > { %2395 = vmatprep.subr.bf16.mxu1 %v3094_v6 }
 0x35a   : > { %2386 = vmatmul.mubr.msk.bf16.vlgmr.msra.gmra.mrb[4].mxu1 %vm816_vm2, %v934_v39 }
 0x35b   : > { %2399 = vmatprep.mubr.msk.bf16.mxu1 %vm3095_vm1, %v3094_v6  ;;  %2396 = vmatpush3.bf16.msra.mxu1 %v2648_v18 }
 0x35c   : > { %2397 = vmatprep.subr.bf16.mxu1 %v3094_v6 }
 0x35f   : > { %2398 = vmatpush3.bf16.msra.mxu1 %v2649_v20  ;;  %v2256_v20 = vld [vmem:[#allocation14] ss:$0 sm:$0xff] }
 0x360   : > { %2411 = vmatprep.subr.bf16.mxu1 %v3094_v6 }
 0x425   : > { %v857_v44 = vpop.f32.mrb[0].mxu1 }
 0x426   : > { %v863_v45 = vmul.f32 0.25, %v857_v44  ;;  %v2375_v46 = vpop.f32.mrb[1].mxu1  ;;  %v2650_v44 = vld [vmem:[%s3923_s2] sm:$0xff]  }
 0x427   : > { %v860_v47 = vpop.f32.mrb[2].mxu1 }
 0x428   : > { %v2376_v48 = vpop.f32.mrb[3].mxu1  ;;  %v870_v49 = vadd.f32 %v3605_v43, %v863_v45  ;;  %v2651_v45 = vld [vmem:[%s3923_s2 + $0x8] sm:$0xff]  }
 0x42a   : > { %v872_v50 = vsel %vm871_vm4, %v870_v49, -inf }
 0x42b   : > { %873 = vmax.xlane.f32.xlu1 %v872_v50 }
 0x42d   : > { %v977_v51 = vpop.f32.mrb[4].mxu1 }
 0x42e   : > { %v983_v52 = vmul.f32 0.25, %v977_v51  ;;  %v2387_v53 = vpop.f32.mrb[5].mxu1 }
 0x42f   : > { %v980_v54 = vpop.f32.mrb[6].mxu1 }
 0x430   : > { %v2388_v55 = vpop.f32.mrb[7].mxu1  ;;  %v984_v56 = vadd.f32 %v983_v52, %v3605_v43  ;;  %v1117_v52 = vld [vmem:[#allocation11] sm:$0x3] }
 0x431   : > { %v1137_v54 = vrot.slane %v1117_v52, %v3576_v17 }
 0x432   : > { %v985_v57 = vsel %vm871_vm4, %v984_v56, -inf }
 0x433   : > { %986 = vmax.xlane.f32.xlu0 %v985_v57  ;;  %v1142_v57 = vrot.slane %v1117_v52, %v3578_v19 }
 0x449   : > { %997 = vrot.lane.b32.xlu0 %v812_v33, %s3875_s20  ;;  %s3927_s20 = sld [smem:[#allocation38_spill]] }
 0x4b8   : > { %v874_v58 = vpop.xlane.xlu1 %873 }
 0x4b9   : > { %v875_v59 = vsub.f32 %v870_v49, %v874_v58 }
 0x4bb   : > { %v876_v60 = vmul.f32 1.442695, %v875_v59 }
 0x4bd   : > { %2672 = vpow2.f32 %v876_v60 }
 0x4c0   : > { %v987_v61 = vpop.xlane.xlu0 %986 }
 0x4c1   : > { %v988_v62 = vsub.f32 %v984_v56, %v987_v61  ;;  %v2652_v61 = vld [vmem:[%s3924_s30] sm:$0xff]  }
 0x4c3   : > { %v989_v63 = vmul.f32 1.442695, %v988_v62  ;;  %v2653_v62 = vld [vmem:[%s3924_s30 + $0x8] sm:$0xff]  }
 0x4c4   : > { %v998_v11 = vpop.permute.xlu0 %997 }
 0x4c5   : > { %2674 = vpow2.f32 %v989_v63  ;;  %v1003_v13 = vsel %vm889_vm5, %v998_v11, 0  ;;  %v2654_v63 = vld [vmem:[%s3924_s30 + $0x10] sm:$0xff]  }
 0x4c7   : > { %v2673_v0 = vpop.eup %2672 }
 0x4c8   : > { %v878_v1 = vsel %vm871_vm4, %v2673_v0, 0.0 }
 0x4c9   : > { %879 = vadd.xlane.f32.xlu1 %v878_v1  ;;  %v2252_v1 = vld [vmem:[#allocation13] ss:$0 sm:$0xff] }
 0x4cf   : > { %v2675_v2 = vpop.eup %2674 }
 0x4d0   : > { %v991_v3 = vsel %vm871_vm4, %v2675_v2, 0.0 }
 0x4d1   : > { %992 = vadd.xlane.f32.xlu1 %v991_v3 }
 0x4e2   : > { %884 = vrot.lane.b32.xlu1 %v812_v33, %s3101_s13  ;;  %v2248_v33 = vld [vmem:[#allocation10] ss:$0 sm:$0xff] }
 0x556   : > { %v880_v4 = vpop.xlane.xlu1 %879 }
 0x557   : > { %2676 = vrcp.f32 %v880_v4 }
 0x55e   : > { %v993_v5 = vpop.xlane.xlu1 %992 }
 0x55f   : > { %2678 = vrcp.f32 %v993_v5 }
 0x561   : > { %v2677_v7 = vpop.eup %2676 }
 0x562   : > { %v882_v8 = vmul.f32 %v2677_v7, %v2673_v0  ;;  %v885_v9 = vpop.permute.xlu1 %884  ;;  %v2655_v0 = vld [vmem:[%s3924_s30 + $0x18] sm:$0xff]  }
 0x563   : > { %v891_v10 = vsel %vm889_vm5, %v885_v9, 0 }
 0x564   : > { %2378 = vmatpush3.bf16.msra.mxu0 %v891_v10  ;;  %v883_v12 = vpack.c.bf16 %v882_v8, %v882_v8 }
 0x565   : > { %2389 = vmatprep.subr.bf16.mxu0 %v3094_v6 }
 0x567   : > { %2380 = vmatmul.mubr.msk.bf16.vlgmr.msra.gmra.mrb[4].mxu0 %vm871_vm4, %v883_v12 }
 0x568   : > { %2390 = vmatpush3.bf16.msra.mxu0 %v1003_v13  ;;  %2391 = vmatprep.mubr.msk.bf16.mxu0 %vm3095_vm1, %v3094_v6 }
 0x569   : > { %v2679_v14 = vpop.eup %2678  ;;  %2403 = vmatprep.subr.bf16.mxu0 %v3094_v6 }
 0x56a   : > { %v995_v15 = vmul.f32 %v2679_v14, %v2675_v2 }
 0x56c   : > { %v996_v16 = vpack.c.bf16 %v995_v15, %v995_v15 }
 0x56f   : > { %2392 = vmatmul.mubr.msk.bf16.vlgmr.msra.gmra.mrb[8].mxu0 %vm871_vm4, %v996_v16 }
 0x570   : > { %2407 = vmatprep.mubr.msk.bf16.mxu0 %vm3095_vm1, %v3094_v6  ;;  %2404 = vmatpush3.bf16.msra.mxu0 %v2650_v44 }
 0x571   : > { %2405 = vmatprep.subr.bf16.mxu0 %v3094_v6 }
 0x574   : > { %2406 = vmatpush3.bf16.msra.mxu0 %v2651_v45 }
 0x575   : > { %2423 = vmatprep.subr.bf16.mxu0 %v3094_v6 }
 0x63a   : > { %v927_v21 = vpop.f32.mrb[4].mxu0 }
 0x63b   : > { %v2381_v22 = vpop.f32.mrb[5].mxu0 }
 0x63c   : > { %v930_v23 = vpop.f32.mrb[6].mxu0 }
 0x63d   : > { %v2382_v24 = vpop.f32.mrb[7].mxu0 }
 0x642   : > { %v1039_v25 = vpop.f32.mrb[8].mxu0 }
 0x643   : > { %1046 = vrot.lane.b32.xlu1 %v1039_v25, %s3874_s21  ;;  %v2393_v27 = vpop.f32.mrb[9].mxu0 }
 0x644   : > { %v1042_v28 = vpop.f32.mrb[10].mxu0 }
 0x645   : > { %v2394_v29 = vpop.f32.mrb[11].mxu0 }
 0x6b5   : > { %v1047_v30 = vpop.permute.xlu1 %1046 }
 0x6b6   : > { %v1049_v31 = vsel %vm816_vm2, %v927_v21, %v1047_v30 }
 0x6b7   : > { %v1050_v32 = vpack.c.bf16 %v1049_v31, %v1049_v31  ;;  %v2656_v31 = vld [vmem:[%s3843_s3 + $0x10] sm:$0xff]  }
 0x6b9   : > { %2400 = vmatmul.mubr.msk.bf16.vlgmr.msra.gmra.mrb[8].mxu1 %vm718_vm0, %v1050_v32  ;;  %v2657_v32 = vld [vmem:[%s3843_s3 + $0x18] sm:$0xff]  }
 0x6ba   : > { %2419 = vmatprep.mubr.msk.bf16.mxu1 %vm3095_vm1, %v3094_v6  ;;  %2412 = vmatpush3.bf16.msra.mxu1 %v2652_v61 }
 0x6bb   : > { %2413 = vmatprep.subr.bf16.mxu1 %v3094_v6 }
 0x6be   : > { %2414 = vmatpush3.bf16.msra.mxu1 %v2653_v62 }
 0x6bf   : > { %2415 = vmatprep.subr.bf16.mxu1 %v3094_v6 }
 0x6c2   : > { %2416 = vmatpush3.bf16.msra.mxu1 %v2654_v63 }
 0x6c3   : > { %2417 = vmatprep.subr.bf16.mxu1 %v3094_v6 }
 0x6c6   : > { %2418 = vmatpush3.bf16.msra.mxu1 %v2655_v0 }
 0x6c7   : > { %2437 = vmatprep.subr.bf16.mxu1 %v3094_v6 }
 0x78c   : > { %v1111_v34 = vpop.f32.mrb[8].mxu1 }
 0x78d   : > { %v1112_v35 = vadd.f32 %v2248_v33, %v1111_v34  ;;  %v2401_v36 = vpop.f32.mrb[9].mxu1 }
 0x78e   : > { %v1114_v37 = vpop.f32.mrb[10].mxu1 }
 0x78f   : > { %v1118_v38 = vadd.f32 %v1112_v35, %v3582_v26  ;;  %v2402_v39 = vpop.f32.mrb[11].mxu1 }
 0x791   : > { %v1119_v40 = vsel %vm718_vm0, %v1118_v38, 0.0  ;;  %v1123_v41 = vmul.f32 %v1118_v38, %v1118_v38 }
 0x792   : > { %1120 = vadd.xlane.f32.xlu1 %v1119_v40  ;;  %v1304_v40 = vld [vmem:[#allocation16] sm:$0x3] }
 0x793   : > { %v1124_v42 = vsel %vm718_vm0, %v1123_v41, 0.0 }
 0x794   : > { %1125 = vadd.xlane.f32.xlu0 %v1124_v42  ;;  %v1324_v42 = vrot.slane %v1304_v40, %v3576_v17 }
 0x81f   : > { %v1121_v26 = vpop.xlane.xlu1 %1120 }
 0x820   : > { %v1122_v46 = vmul.f32 0.03125, %v1121_v26  ;;  %v1329_v26 = vrot.slane %v1304_v40, %v3578_v19 }
 0x821   : > { %v1126_v47 = vpop.xlane.xlu0 %1125 }
 0x822   : > { %v1128_v48 = vmul.f32 %v1122_v46, %v1122_v46  ;;  %v1127_v49 = vmul.f32 0.03125, %v1126_v47  ;;  %v1130_v53 = vsub.f32 %v1118_v38, %v1122_v46 }
 0x824   : > { %v1129_v50 = vsub.f32 %v1127_v49, %v1128_v48  ;;  %v2266_v49 = vld [vmem:[#allocation8 + $0x1] ss:$0 sm:$0xff] }
 0x826   : > { %v1131_v51 = vadd.f32 1e-05, %v1129_v50 }
 0x828   : > { %2680 = vrsqrt.f32 %v1131_v51 }
 0x832   : > { %v2681_v55 = vpop.eup %2680 }
 0x833   : > { %v1133_v56 = vmul.f32 %v2681_v55, %v1130_v53 }
 0x835   : > { %v1138_v58 = vmul.f32 %v1137_v54, %v1133_v56 }
 0x837   : > { %v1143_v59 = vadd.f32 %v1142_v57, %v1138_v58 }
 0x839   : > { %v1144_v60 = vpack.c.bf16 %v1143_v59, %v1143_v59 }
 0x83b   : > { %2408 = vmatmul.mubr.msk.bf16.vlgmr.msra.gmra.mrb[12].mxu0 %vm718_vm0, %v1144_v60 }
 0x83c   : > { %2427 = vmatprep.mubr.msk.bf16.mxu0 %vm3095_vm1, %v3094_v6  ;;  %2424 = vmatpush3.bf16.msra.mxu0 %v2656_v31 }
 0x83d   : > { %2425 = vmatprep.subr.bf16.mxu0 %v3094_v6 }
 0x840   : > { %2426 = vmatpush3.bf16.msra.mxu0 %v2657_v32 }
 0x841   : > { %2431 = vmatprep.subr.bf16.mxu0 %v3094_v6 }
 0x90e   : > { %v1205_v2 = vpop.f32.mrb[12].mxu0 }
 0x90f   : > { %v1206_v3 = vadd.f32 %v2252_v1, %v1205_v2  ;;  %v2409_v4 = vpop.f32.mrb[13].mxu0 }
 0x910   : > { %v1208_v5 = vpop.f32.mrb[14].mxu0 }
 0x911   : > { %v1212_v7 = vmul.f32 0.044715, %v1206_v3  ;;  %v2410_v8 = vpop.f32.mrb[15].mxu0  ;;  %v1211_v14 = vmul.f32 0.5, %v1206_v3 }
 0x913   : > { %v1213_v9 = vmul.f32 %v1212_v7, %v1206_v3 }
 0x915   : > { %v1214_v10 = vmul.f32 %v1213_v9, %v1206_v3 }
 0x917   : > { %v1215_v11 = vadd.f32 %v1214_v10, %v1206_v3 }
 0x919   : > { %v1216_v12 = vmul.f32 0.7978846, %v1215_v11 }
 0x91b   : > { %2682 = vtanh.f32 %v1216_v12 }
 0x925   : > { %v2683_v13 = vpop.eup %2682 }
 0x926   : > { %v1218_v15 = vadd.f32 1.0, %v2683_v13 }
 0x928   : > { %v1219_v16 = vmul.f32 %v1218_v15, %v1211_v14 }
 0x92a   : > { %v1220_v18 = vpack.c.bf16 %v1219_v16, %v1219_v16 }
 0x92c   : > { %2420 = vmatmul.mubr.msk.bf16.vlgmr.msra.gmra.mrb[12].mxu1 %vm1260_vm6, %v1220_v18 }
 0x92d   : > { %2439 = vmatprep.mubr.msk.bf16.mxu1 %vm3095_vm1, %v3094_v6 }
 0x9ff   : > { %v1298_v21 = vpop.f32.mrb[12].mxu1 }
 0xa00   : > { %v1299_v22 = vadd.f32 %v2256_v20, %v1298_v21  ;;  %v2421_v23 = vpop.f32.mrb[13].mxu1 }
 0xa01   : > { %v1301_v24 = vpop.f32.mrb[14].mxu1 }
 0xa02   : > { %v1305_v25 = vadd.f32 %v1299_v22, %v1143_v59  ;;  %v2422_v27 = vpop.f32.mrb[15].mxu1 }
 0xa04   : > { %v1306_v28 = vsel %vm718_vm0, %v1305_v25, 0.0  ;;  %v1310_v29 = vmul.f32 %v1305_v25, %v1305_v25 }
 0xa05   : > { %1307 = vadd.xlane.f32.xlu1 %v1306_v28 }
 0xa06   : > { %v1311_v30 = vsel %vm718_vm0, %v1310_v29, 0.0 }
 0xa09   : > { %1312 = vadd.xlane.f32.xlu1 %v1311_v30 }
 0xa92   : > { %v1308_v33 = vpop.xlane.xlu1 %1307 }
 0xa93   : > { %v1309_v34 = vmul.f32 0.03125, %v1308_v33 }
 0xa95   : > { %v1315_v36 = vmul.f32 %v1309_v34, %v1309_v34  ;;  %v1317_v41 = vsub.f32 %v1305_v25, %v1309_v34 }
 0xa96   : > { %v1313_v35 = vpop.xlane.xlu1 %1312 }
 0xa97   : > { %v1314_v37 = vmul.f32 0.03125, %v1313_v35 }
 0xa99   : > { %v1316_v38 = vsub.f32 %v1314_v37, %v1315_v36  ;;  %v2658_v36 = vld [vmem:[%s3922_s28 + $0x10] sm:$0xff]   ;;  %v2659_v37 = vld [vmem:[%s3922_s28 + $0x18] sm:$0xff]  }
 0xa9b   : > { %v1318_v39 = vadd.f32 1e-05, %v1316_v38 }
 0xa9d   : > { %2684 = vrsqrt.f32 %v1318_v39 }
 0xaa7   : > { %v2685_v44 = vpop.eup %2684 }
 0xaa8   : > { %v1320_v45 = vmul.f32 %v2685_v44, %v1317_v41 }
 0xaaa   : > { %v1325_v46 = vmul.f32 %v1324_v42, %v1320_v45 }
 0xaac   : > { %v3685_v47 = vadd.f32 %v1329_v26, %v1325_v46 }
 0xaae   : > { %v1331_v48 = vpack.c.bf16 %v3685_v47, %v3685_v47 }
 0xab0   : > { %2428 = vmatmul.mubr.msk.bf16.vlgmr.msra.gmra.mrb[16].mxu0 %vm718_vm0, %v1331_v48 }
 0xab1   : > { %2433 = vmatprep.mubr.msk.bf16.mxu0 %vm3095_vm1, %v3094_v6 }
 0xb83   : > { %v1394_v50 = vpop.f32.mrb[16].mxu0 }
 0xb84   : > { %v1395_v51 = vadd.f32 %v2266_v49, %v1394_v50  ;;  %v2429_v52 = vpop.f32.mrb[17].mxu0  ;;  %v2278_v50 = vld [vmem:[#allocation10 + $0x1] ss:$0 sm:$0xff] }
 0xb85   : > { %v1397_v53 = vpop.f32.mrb[18].mxu0 }
 0xb86   : > { %v1400_v54 = vpack.c.bf16 %v1395_v51, %v1395_v51  ;;  %v2430_v55 = vpop.f32.mrb[19].mxu0 }
 0xb88   : > { %1514 = vrot.lane.b32.xlu1 %v1400_v54, %s3098_s1  ;;  %1402 = vrot.lane.b32.xlu0 %v1400_v54, %s3097_s19  ;;  %s3928_s19 = sld [smem:[#allocation39_spill]]  ;;  %s3103_s1 = smov [#allocation19]  }
 0xb8c   : > { %1512 = vrot.lane.b32.xlu1 %v1400_v54, %s3096_s22  ;;  %s3925_s22 = smov 48  }
 0xbfa   : > { %v1403_v56 = vpop.permute.xlu0 %1402  ;;  %v1515_v58 = vpop.permute.xlu1 %1514 }
 0xbfb   : > { %v1408_v57 = vsel %vm816_vm2, %v1403_v56, 0  ;;  %v1520_v59 = vsel %vm816_vm2, %v1515_v58, 0 }
 0xbfc   : > { %2432 = vmatpush3.bf16.xpose.msra.mxu0 %v1408_v57 }
 0xbfd   : > { %2443 = vmatprep.subr.bf16.mxu0 %v3094_v6 }
 0xbfe   : > { %v1513_v60 = vpop.permute.xlu1 %1512 }
 0xc03   : > { %2434 = vmatmul.mubr.msk.bf16.vlgmr.msra.gmra.mrb[20].mxu0 %vm816_vm2, %v1400_v54 }
 0xc04   : > { %2444 = vmatpush3.bf16.xpose.msra.mxu0 %v1520_v59  ;;  %2445 = vmatprep.mubr.msk.bf16.mxu0 %vm3095_vm1, %v3094_v6 }
 0xc05   : > { %2455 = vmatprep.subr.bf16.mxu0 %v3094_v6 }
 0xc0b   : > { %2446 = vmatmul.mubr.msk.bf16.vlgmr.msra.gmra.mrb[24].mxu0 %vm816_vm2, %v1513_v60  ;;  %v2660_v60 = vld [vmem:[%s3923_s2 + $0x10] sm:$0xff]  }
 0xc0c   : > { %2459 = vmatprep.mubr.msk.bf16.mxu0 %vm3095_vm1, %v3094_v6  ;;  %2456 = vmatpush3.bf16.msra.mxu0 %v2658_v36  ;;  %v2298_v36 = vld [vmem:[#allocation14 + $0x1] ss:$0 sm:$0xff] }
 0xc0d   : > { %2457 = vmatprep.subr.bf16.mxu0 %v3094_v6 }
 0xc10   : > { %2458 = vmatpush3.bf16.msra.mxu0 %v2659_v37 }
 0xc11   : > { %2471 = vmatprep.subr.bf16.mxu0 %v3094_v6 }
 0xcd6   : > { %v1444_v61 = vpop.f32.mrb[20].mxu0 }
 0xcd7   : > { %v1450_v62 = vmul.f32 0.25, %v1444_v61  ;;  %v2435_v63 = vpop.f32.mrb[21].mxu0  ;;  %v2661_v61 = vld [vmem:[%s3923_s2 + $0x18] sm:$0xff]  }
 0xcd8   : > { %v1447_v0 = vpop.f32.mrb[22].mxu0 }
 0xcd9   : > { %v2436_v1 = vpop.f32.mrb[23].mxu0  ;;  %v1451_v2 = vadd.f32 %v1450_v62, %v3605_v43 }
 0xcdb   : > { %v1452_v3 = vsel %vm871_vm4, %v1451_v2, -inf }
 0xcdc   : > { %1453 = vmax.xlane.f32.xlu0 %v1452_v3 }
 0xcde   : > { %v1556_v4 = vpop.f32.mrb[24].mxu0 }
 0xcdf   : > { %v1562_v5 = vmul.f32 0.25, %v1556_v4  ;;  %v2447_v7 = vpop.f32.mrb[25].mxu0  ;;  %v1699_v4 = vld [vmem:[#allocation11 + $0x2] sm:$0x3] }
 0xce0   : > { %v1559_v8 = vpop.f32.mrb[26].mxu0  ;;  %v1719_v7 = vrot.slane %v1699_v4, %v3576_v17 }
 0xce1   : > { %v2448_v9 = vpop.f32.mrb[27].mxu0  ;;  %v1563_v10 = vadd.f32 %v1562_v5, %v3605_v43 }
 0xce3   : > { %v1564_v11 = vsel %vm871_vm4, %v1563_v10, -inf }
 0xce4   : > { %1565 = vmax.xlane.f32.xlu1 %v1564_v11 }
 0xcf5   : > { %1464 = vrot.lane.b32.xlu1 %v1400_v54, %s3101_s13  ;;  %s2990_s13 = sshll.u32 %s3103_s1, 4  ;;  %s2991_s13 = int_to_ptr.vmem [resolvable:$false] %s2990_s13 }
 0xcf6   : > { %p2993_p6 = scmp.lt.s32.totalorder %s3798_s8, %s2991_s13 }
 0xd69   : > { %v1454_v12 = vpop.xlane.xlu0 %1453 }
 0xd6a   : > { %v1455_v13 = vsub.f32 %v1451_v2, %v1454_v12 }
 0xd6c   : > { %v1456_v14 = vmul.f32 1.442695, %v1455_v13 }
 0xd6e   : > { %2686 = vpow2.f32 %v1456_v14  ;;  %v2662_v14 = vld [vmem:[%s3924_s30 + $0x20] sm:$0xff]  }
 0xd71   : > { %v1566_v15 = vpop.xlane.xlu1 %1565 }
 0xd72   : > { %v1567_v16 = vsub.f32 %v1563_v10, %v1566_v15  ;;  %v1724_v10 = vrot.slane %v1699_v4, %v3578_v19  ;;  %v2663_v15 = vld [vmem:[%s3924_s30 + $0x28] sm:$0xff]  }
 0xd74   : > { %v1568_v18 = vmul.f32 1.442695, %v1567_v16  ;;  %v2664_v16 = vld [vmem:[%s3924_s30 + $0x30] sm:$0xff]  }
 0xd75   : > { %v1465_v20 = vpop.permute.xlu1 %1464 }
 0xd76   : > { %2688 = vpow2.f32 %v1568_v18  ;;  %v1470_v21 = vsel %vm889_vm5, %v1465_v20, 0  ;;  %v2665_v18 = vld [vmem:[%s3924_s30 + $0x38] sm:$0xff]   ;;  %v2286_v20 = vld [vmem:[#allocation13 + $0x1] ss:$0 sm:$0xff] }
 0xd77   : > { %2438 = vmatpush3.bf16.msra.mxu1 %v1470_v21 }
 0xd78   : > { %v2687_v22 = vpop.eup %2686  ;;  %2449 = vmatprep.subr.bf16.mxu1 %v3094_v6 }
 0xd79   : > { %v1458_v43 = vsel %vm871_vm4, %v2687_v22, 0.0 }
 0xd7a   : > { %1459 = vadd.xlane.f32.xlu0 %v1458_v43 }
 0xd80   : > { %v2689_v23 = vpop.eup %2688 }
 0xd81   : > { %v1570_v24 = vsel %vm871_vm4, %v2689_v23, 0.0 }
 0xd82   : > { %1571 = vadd.xlane.f32.xlu0 %v1570_v24 }
 0xd98   : > { %1576 = vrot.lane.b32.xlu0 %v1400_v54, %s3925_s22 }
 0xe07   : > { %v1460_v25 = vpop.xlane.xlu0 %1459 }
 0xe08   : > { %2690 = vrcp.f32 %v1460_v25 }
 0xe0f   : > { %v1572_v27 = vpop.xlane.xlu0 %1571 }
 0xe10   : > { %2692 = vrcp.f32 %v1572_v27 }
 0xe12   : > { %v2691_v28 = vpop.eup %2690 }
 0xe13   : > { %v1462_v29 = vmul.f32 %v2691_v28, %v2687_v22  ;;  %v1577_v30 = vpop.permute.xlu0 %1576 }
 0xe14   : > { %v1582_v32 = vsel %vm889_vm5, %v1577_v30, 0 }
 0xe15   : > { %v1463_v31 = vpack.c.bf16 %v1462_v29, %v1462_v29 }
 0xe17   : > { %2440 = vmatmul.mubr.msk.bf16.vlgmr.msra.gmra.mrb[16].mxu1 %vm871_vm4, %v1463_v31 }
 0xe18   : > { %2450 = vmatpush3.bf16.msra.mxu1 %v1582_v32  ;;  %2451 = vmatprep.mubr.msk.bf16.mxu1 %vm3095_vm1, %v3094_v6 }
 0xe19   : > { %2463 = vmatprep.subr.bf16.mxu1 %v3094_v6 }
 0xe1a   : > { %v2693_v33 = vpop.eup %2692 }
 0xe1b   : > { %v1574_v34 = vmul.f32 %v2693_v33, %v2689_v23 }
 0xe1d   : > { %v1575_v35 = vpack.c.bf16 %v1574_v34, %v1574_v34 }
 0xe1f   : > { %2452 = vmatmul.mubr.msk.bf16.vlgmr.msra.gmra.mrb[20].mxu1 %vm871_vm4, %v1575_v35 }
 0xe20   : > { %2467 = vmatprep.mubr.msk.bf16.mxu1 %vm3095_vm1, %v3094_v6  ;;  %2464 = vmatpush3.bf16.msra.mxu1 %v2660_v60 }
 0xe21   : > { %2465 = vmatprep.subr.bf16.mxu1 %v3094_v6 }
 0xe24   : > { %2466 = vmatpush3.bf16.msra.mxu1 %v2661_v61 }
 0xe25   : > { %2483 = vmatprep.subr.bf16.mxu1 %v3094_v6 }
 0xeea   : > { %v1506_v38 = vpop.f32.mrb[16].mxu1 }
 0xeeb   : > { %v2441_v39 = vpop.f32.mrb[17].mxu1 }
 0xeec   : > { %v1509_v40 = vpop.f32.mrb[18].mxu1 }
 0xeed   : > { %v2442_v41 = vpop.f32.mrb[19].mxu1 }
 0xef2   : > { %v1618_v42 = vpop.f32.mrb[20].mxu1 }
 0xef3   : > { %1625 = vrot.lane.b32.xlu1 %v1618_v42, %s3926_s29  ;;  %v2453_v44 = vpop.f32.mrb[21].mxu1  ;;  %s2310_s29 = sshll.u32 %s3215_s0, 4  ;;  %s2986_s0 = scalar_lea.vmem %s3798_s8, 16 }
 0xef4   : > { %v1621_v45 = vpop.f32.mrb[22].mxu1  ;;  %s3796_s22 = scalar_lea.hbm %s3930_s4, %s2310_s29  ;;  %p2987_p10 = scmp.ne.s32.totalorder %s3798_s8, %s2986_s0 }
 0xef5   : > { %v2454_v26 = vpop.f32.mrb[23].mxu1 }
 0xef6   : > { %p2988_p9 = pnand %p2987_p10, %p3931_p11 }
 0xef8   : > { %p2989_p8 = pneg %p2988_p9 }
 0xf65   : > { %v1626_v46 = vpop.permute.xlu1 %1625 }
 0xf66   : > { %v1628_v48 = vsel %vm816_vm2, %v1506_v38, %v1626_v46  ;;  %v2666_v46 = vld [vmem:[%s3927_s20] sm:$0xff]  }
 0xf67   : > { %v1629_v49 = vpack.c.bf16 %v1628_v48, %v1628_v48  ;;  %v2667_v48 = vld [vmem:[%s3927_s20 + $0x8] sm:$0xff]  }
 0xf69   : > { %2460 = vmatmul.mubr.msk.bf16.vlgmr.msra.gmra.mrb[28].mxu0 %vm718_vm0, %v1629_v49 }
 0xf6a   : > { %2479 = vmatprep.mubr.msk.bf16.mxu0 %vm3095_vm1, %v3094_v6  ;;  %2472 = vmatpush3.bf16.msra.mxu0 %v2662_v14 }
 0xf6b   : > { %2473 = vmatprep.subr.bf16.mxu0 %v3094_v6 }
 0xf6e   : > { %2474 = vmatpush3.bf16.msra.mxu0 %v2663_v15 }
 0xf6f   : > { %2475 = vmatprep.subr.bf16.mxu0 %v3094_v6 }
 0xf72   : > { %2476 = vmatpush3.bf16.msra.mxu0 %v2664_v16 }
 0xf73   : > { %2477 = vmatprep.subr.bf16.mxu0 %v3094_v6 }
 0xf76   : > { %2478 = vmatpush3.bf16.msra.mxu0 %v2665_v18 }
0x103c   : > { %v1692_v51 = vpop.f32.mrb[28].mxu0 }
0x103d   : > { %v1693_v52 = vadd.f32 %v2278_v50, %v1692_v51  ;;  %v2461_v53 = vpop.f32.mrb[29].mxu0 }
0x103e   : > { %v1695_v54 = vpop.f32.mrb[30].mxu0 }
0x103f   : > { %v1700_v55 = vadd.f32 %v1693_v52, %v3685_v47  ;;  %v2462_v56 = vpop.f32.mrb[31].mxu0 }
0x1040   : > { %v1890_v56 = vld [vmem:[#allocation16 + $0x2] sm:$0x3] }
0x1041   : > { %v1701_v57 = vsel %vm718_vm0, %v1700_v55, 0.0  ;;  %v1705_v58 = vmul.f32 %v1700_v55, %v1700_v55  ;;  %v1915_v61 = vrot.slane %v1890_v56, %v3578_v19 }
0x1042   : > { %1702 = vadd.xlane.f32.xlu1 %v1701_v57 }
0x1043   : > { %v1706_v59 = vsel %vm718_vm0, %v1705_v58, 0.0  ;;  %v1910_v58 = vrot.slane %v1890_v56, %v3576_v17  ;;  %v1922_v17 = vld [vmem:[%s3928_s19] sm:$0x1]  ;;  %s2042_s19 = scalar_lea.sflag [#allocation4], %s3526_s9 }
0x1044   : > { %1707 = vadd.xlane.f32.xlu0 %v1706_v59 }
0x10cf   : > { %v1703_v47 = vpop.xlane.xlu1 %1702 }
0x10d0   : > { %v1704_v62 = vmul.f32 0.03125, %v1703_v47 }
0x10d1   : > { %v1708_v63 = vpop.xlane.xlu0 %1707 }
0x10d2   : > { %v1710_v0 = vmul.f32 %v1704_v62, %v1704_v62  ;;  %v1709_v1 = vmul.f32 0.03125, %v1708_v63  ;;  %v1712_v5 = vsub.f32 %v1700_v55, %v1704_v62 }
0x10d4   : > { %v1711_v2 = vsub.f32 %v1709_v1, %v1710_v0  ;;  %v2668_v0 = vld [vmem:[#allocation17] sm:$0xff]   ;;  %v2669_v1 = vld [vmem:[#allocation17 + $0x8] sm:$0xff]  }
0x10d6   : > { %v1713_v3 = vadd.f32 1e-05, %v1711_v2 }
0x10d8   : > { %2694 = vrsqrt.f32 %v1713_v3 }
0x10e2   : > { %v2695_v8 = vpop.eup %2694 }
0x10e3   : > { %v1715_v9 = vmul.f32 %v2695_v8, %v1712_v5 }
0x10e5   : > { %v1720_v11 = vmul.f32 %v1719_v7, %v1715_v9 }
0x10e7   : > { %v1725_v12 = vadd.f32 %v1724_v10, %v1720_v11 }
0x10e9   : > { %v1726_v13 = vpack.c.bf16 %v1725_v12, %v1725_v12 }
0x10eb   : > { %2468 = vmatmul.mubr.msk.bf16.vlgmr.msra.gmra.mrb[24].mxu1 %vm718_vm0, %v1726_v13 }
0x10ec   : > { %2487 = vmatprep.mubr.msk.bf16.mxu1 %vm3095_vm1, %v3094_v6  ;;  %2484 = vmatpush3.bf16.msra.mxu1 %v2666_v46 }
0x10ed   : > { %2485 = vmatprep.subr.bf16.mxu1 %v3094_v6 }
0x10f0   : > { %2486 = vmatpush3.bf16.msra.mxu1 %v2667_v48 }
0x10f1   : > { %2491 = vmatprep.subr.bf16.mxu1 %v3094_v6 }
0x11be   : > { %v1789_v21 = vpop.f32.mrb[24].mxu1 }
0x11bf   : > { %v1790_v22 = vadd.f32 %v2286_v20, %v1789_v21  ;;  %v2469_v43 = vpop.f32.mrb[25].mxu1 }
0x11c0   : > { %v1792_v23 = vpop.f32.mrb[26].mxu1 }
0x11c1   : > { %v1796_v24 = vmul.f32 0.044715, %v1790_v22  ;;  %v2470_v25 = vpop.f32.mrb[27].mxu1  ;;  %v1795_v32 = vmul.f32 0.5, %v1790_v22 }
0x11c3   : > { %v1797_v27 = vmul.f32 %v1796_v24, %v1790_v22 }
0x11c5   : > { %v1798_v28 = vmul.f32 %v1797_v27, %v1790_v22 }
0x11c7   : > { %v1799_v29 = vadd.f32 %v1798_v28, %v1790_v22 }
0x11c9   : > { %v1800_v30 = vmul.f32 0.7978846, %v1799_v29 }
0x11cb   : > { %2696 = vtanh.f32 %v1800_v30 }
0x11d5   : > { %v2697_v31 = vpop.eup %2696 }
0x11d6   : > { %v1802_v33 = vadd.f32 1.0, %v2697_v31 }
0x11d8   : > { %v1803_v34 = vmul.f32 %v1802_v33, %v1795_v32 }
0x11da   : > { %v1804_v35 = vpack.c.bf16 %v1803_v34, %v1803_v34 }
0x11dc   : > { %2480 = vmatmul.mubr.msk.bf16.vlgmr.msra.gmra.mrb[32].mxu0 %vm1260_vm6, %v1804_v35 }
0x12af   : > { %v1883_v37 = vpop.f32.mrb[32].mxu0 }
0x12b0   : > { %v1884_v38 = vadd.f32 %v2298_v36, %v1883_v37  ;;  %v2481_v39 = vpop.f32.mrb[33].mxu0 }
0x12b1   : > { %v1886_v40 = vpop.f32.mrb[34].mxu0 }
0x12b2   : > { %v1891_v41 = vadd.f32 %v1884_v38, %v1725_v12  ;;  %v2482_v42 = vpop.f32.mrb[35].mxu0 }
0x12b4   : > { %v1892_v44 = vsel %vm718_vm0, %v1891_v41, 0.0  ;;  %v1896_v45 = vmul.f32 %v1891_v41, %v1891_v41 }
0x12b5   : > { %1893 = vadd.xlane.f32.xlu0 %v1892_v44 }
0x12b6   : > { %v1897_v26 = vsel %vm718_vm0, %v1896_v45, 0.0 }
0x12b7   : > { %1898 = vadd.xlane.f32.xlu1 %v1897_v26 }
0x1342   : > { %v1894_v49 = vpop.xlane.xlu0 %1893 }
0x1343   : > { %v1895_v50 = vmul.f32 0.03125, %v1894_v49 }
0x1344   : > { %v1899_v51 = vpop.xlane.xlu1 %1898 }
0x1345   : > { %v1901_v52 = vmul.f32 %v1895_v50, %v1895_v50  ;;  %v1900_v53 = vmul.f32 0.03125, %v1899_v51  ;;  %v1903_v57 = vsub.f32 %v1891_v41, %v1895_v50 }
0x1347   : > { %v1902_v54 = vsub.f32 %v1900_v53, %v1901_v52 }
0x1349   : > { %v1904_v55 = vadd.f32 1e-05, %v1902_v54 }
0x134b   : > { %2698 = vrsqrt.f32 %v1904_v55 }
0x1355   : > { %v2699_v59 = vpop.eup %2698 }
0x1356   : > { %v1906_v60 = vmul.f32 %v2699_v59, %v1903_v57 }
0x1358   : > { %v1911_v47 = vmul.f32 %v1910_v58, %v1906_v60 }
0x135a   : > { %v1916_v62 = vadd.f32 %v1915_v61, %v1911_v47 }
0x135c   : > { %v1917_v63 = vpack.c.bf16 %v1916_v62, %v1916_v62 }
0x135e   : > { %2488 = vmatmul.mubr.msk.bf16.vlgmr.msra.gmra.mrb[28].mxu1 %vm718_vm0, %v1917_v63 }
0x135f   : > { %2495 = vmatprep.mubr.msk.bf16.mxu1 %vm3095_vm1, %v3094_v6  ;;  %2492 = vmatpush3.bf16.msra.mxu1 %v2668_v0 }
0x1360   : > { %2493 = vmatprep.subr.bf16.mxu1 %v3094_v6  ;;  %v1984_v6 = vld [vmem:[%s3929_s16] sm:$0x1]  ;;  %s2992_s16 = scalar_lea.vmem %s2991_s13, 32 }
0x1361   : > { %p2994_p2 = scmp.lt.s32.totalorder %s2992_s16, %s2986_s0 }
0x1363   : > { %2494 = vmatpush3.bf16.msra.mxu1 %v2669_v1  ;;  %p2995_p12 = por %p2994_p2, %p2993_p6 }
0x1365   : > { %p2996_p5 = pnand %p2995_p12, %p2989_p8 }
0x1431   : > { %v1972_v19 = vpop.f32.mrb[28].mxu1 }
0x1432   : > { %v1973_v2 = vadd.f32 %v1972_v19, %v1922_v17  ;;  %v2489_v3 = vpop.f32.mrb[29].mxu1 }
0x1433   : > { %v1975_v4 = vpop.f32.mrb[30].mxu1 }
0x1434   : > { %2700 = vtanh.f32 %v1973_v2  ;;  %v2490_v5 = vpop.f32.mrb[31].mxu1 }
0x143e   : > { %v2701_v7 = vpop.eup %2700 }
0x143f   : > { %v1979_v8 = vpack.c.bf16 %v2701_v7, %v2701_v7 }
0x1441   : > { %2496 = vmatmul.mubr.msk.bf16.vlgmr.msra.gmra.mrb[32].mxu1 %vm718_vm0, %v1979_v8 }
0x1514   : > { %v2034_v9 = vpop.f32.mrb[32].mxu1 }
0x1515   : > { %v2035_v10 = vadd.f32 %v2034_v9, %v1984_v6  ;;  %v2497_v11 = vpop.f32.mrb[33].mxu1 }
0x1516   : > { %v2037_v12 = vpop.f32.mrb[34].mxu1 }
0x1517   : > { %2040 = vst [vmem:[%s710_s6] sm:$0x1] %v2035_v10  ;;  %v2498_v13 = vpop.f32.mrb[35].mxu1 }
0x1518   : > { %2999 = shalt.err (!%p2996_p5)
}
0x1519   : > { %s3000_s9 = scalar_lea.hbm %s3796_s22, 16  ;;  %s3004_s21 = scalar_lea.hbm %s3930_s4, 32 }
0x151a   : > { %p3001_p7 = scmp.ne.s32.totalorder %s3796_s22, %s3000_s9  ;;  %p3005_p3 = scmp.lt.u32.totalorder %s3796_s22, %s3930_s4 }
0x151b   : > { %p3006_p13 = scmp.lt.u32.totalorder %s3004_s21, %s3000_s9  ;;  %p3008_p10 = scmp.lt.u32.totalorder %s3000_s9, %s3796_s22 }
0x151c   : > { %p3002_p4 = pnand %p3001_p7, %p3931_p11 }
0x151d   : > { %p3007_p0 = por %p3006_p13, %p3005_p3 }
0x151e   : > { %p3003_p1 = pneg %p3002_p4 }
0x151f   : > { %p3009_p9 = por %p3008_p10, %p3007_p0 }
0x1521   : > { %p3010_p8 = pnand %p3009_p9, %p3003_p1 }
0x1523   : > { %3013 = shalt.err (!%p3010_p8)
}
0x1524   : > { %2535 = dma.vmem_to_hbm [thread:$0]  (%p3931_p11), %s3798_s8, 16, %s3796_s22, %s2042_s19  }
0x1525 PF: > { %s2066_s0 = sand.u32 1, %s3064_s24   ;;  %p3932_p6 = scmp.ne.s32.totalorder %s3905_s23, 0 }
0x1526   : > { %p3933_p2 = scmp.ge.s32.totalorder %s3076_s27, 2  ;;  %s2067_s13 = scalar_lea.sflag [#allocation4], %s2066_s0 }
0x1528   : > { %p2570_p12 = pnand %p3933_p2, %p3932_p6 }
0x152a   : > { %3059 = dma.done.wait (!%p2570_p12), %s2067_s13, 16  }
0x152b   : > { %3061 = vsyncadd (!%p2570_p12), %s2067_s13, 4294967280  ;;  %p37_p5 = scmp.ge.s32.totalorder %s3417_s10, 4   ;;  %s3934_s24 = smov %s3068_s25 }
0x152c   : > { %s3935_s25 = smov %s3072_s26  ;;  %s3936_s26 = smov %s3428_s5 }
0x152d   : > { %s3937_s27 = smov %s3417_s10  ;;  %39 = sbr.rel (!%p37_p5) target bundleno = 26 (0x1a), region = 188 }
0x1534   :  { %2071 = vsyncpa [#allocation3], 1 }
0x1535   :  { %2073 = vsyncpa [#allocation3 + $0x1], 1 }
0x1536   :  { %2074 = vsyncpa [#allocation6], 1 }
0x1537   :  { %2076 = vsyncpa [#allocation6 + $0x1], 1 }
0x1538   :  { %2077 = vsyncpa [#allocation9], 1 }
0x1539   :  { %2078 = vsyncpa [#allocation12], 1 }
0x153a   :  { %2079 = vsyncpa [#allocation15], 1 }
0x153b   :  { %2080 = vsyncpa [#allocation18], 1 }
0x153c   :  { %2081 = vsyncpa [#allocation4], 1 }
0x153d   :  { %2083 = vsyncpa [#allocation4 + $0x1], 1 }

</bundles_post_ra>
